<compile_context>
chip_gen: v5e
topology: v5e:2x2
jax: 0.10.0
libtpu: 0.0.40
codegen_flags: <defaults>
</compile_context>

<pallas_src>
import functools
import math

import jax
import jax.numpy as jnp
from jax import lax
from jax.experimental import pallas as pl
from jax.experimental.pallas import tpu as pltpu


# ----------------------------------------------------------------------------
# Small helpers
# ----------------------------------------------------------------------------

def _round_up(x, m):
    return ((x + m - 1) // m) * m


def _pad_rows(a, rows):
    return jnp.pad(a, ((0, rows - a.shape[0]),) + ((0, 0),) * (a.ndim - 1))


def _pad_cols(a, cols):
    return jnp.pad(a, ((0, 0), (0, cols - a.shape[1])))


def _pad2(a, rows, cols):
    return jnp.pad(a, ((0, rows - a.shape[0]), (0, cols - a.shape[1])))


# ----------------------------------------------------------------------------
# Pallas kernels
# ----------------------------------------------------------------------------

def _text_fused_kernel(emb_ref, bbox_ref, mask_ref, wb_ref, bb_ref,
                       we_ref, be_ref, wc_ref, bc_ref,
                       feat_ref, logit_ref):
    """Fused token path for a (tm, .) row tile (batch folded into rows).

    x    = (emb_sum + bbox @ Wb + bb) * attn_mask
    feat = gelu(x @ We + be)             -> text_mm_feat
    out  = feat @ Wc + bc                -> bio classifier logits
    """
    f32, bf16 = jnp.float32, jnp.bfloat16
    bbox_proj = jnp.dot(bbox_ref[...].astype(bf16), wb_ref[...],
                        preferred_element_type=f32) + bb_ref[...]
    x = (emb_ref[...] + bbox_proj) * mask_ref[...]
    # TODO(synk): PyTorch nn.GELU is exact-erf; tanh-approx GELU used in this
    # backbone stand-in.
    feat = jax.nn.gelu(jnp.dot(x.astype(bf16), we_ref[...],
                               preferred_element_type=f32) + be_ref[...])
    feat_ref[...] = feat
    logit_ref[...] = jnp.dot(feat.astype(bf16), wc_ref[...],
                             preferred_element_type=f32) + bc_ref[...]


def pallas_text_fused(emb2d, bbox2d, mask2d, wb, bb, we, be, wc, bc, *, tm):
    Mp, Hp = emb2d.shape
    Cp = wc.shape[1]
    grid = (Mp // tm,)
    return pl.pallas_call(
        _text_fused_kernel,
        out_shape=(jax.ShapeDtypeStruct((Mp, Hp), jnp.float32),
                   jax.ShapeDtypeStruct((Mp, Cp), jnp.float32)),
        grid=grid,
        in_specs=[
            pl.BlockSpec((tm, Hp), lambda i: (i, 0)),   # emb_sum rows
            pl.BlockSpec((tm, 4), lambda i: (i, 0)),    # bbox rows
            pl.BlockSpec((tm, 1), lambda i: (i, 0)),    # attention mask rows
            pl.BlockSpec((4, Hp), lambda i: (0, 0)),    # bbox_w (bf16)
            pl.BlockSpec((1, Hp), lambda i: (0, 0)),    # bbox_b
            pl.BlockSpec((Hp, Hp), lambda i: (0, 0)),   # enc_w (bf16)
            pl.BlockSpec((1, Hp), lambda i: (0, 0)),    # enc_b
            pl.BlockSpec((Hp, Cp), lambda i: (0, 0)),   # bio_w (bf16)
            pl.BlockSpec((1, Cp), lambda i: (0, 0)),    # bio_b
        ],
        out_specs=(pl.BlockSpec((tm, Hp), lambda i: (i, 0)),
                   pl.BlockSpec((tm, Cp), lambda i: (i, 0))),
        compiler_params=pltpu.CompilerParams(
            dimension_semantics=("parallel",),
            vmem_limit_bytes=64 * 1024 * 1024),
    )(emb2d, bbox2d, mask2d, wb, bb, we, be, wc, bc)


def _img_proj_kernel(x_ref, w_ref, b_ref, o_ref, acc_ref):
    """K-tiled image projection: o = tanh(x @ W + b), f32 VMEM accumulator."""
    k = pl.program_id(1)

    @pl.when(k == 0)
    def _init():
        acc_ref[...] = jnp.zeros_like(acc_ref)

    acc_ref[...] += jnp.dot(x_ref[...].astype(jnp.bfloat16), w_ref[...],
                            preferred_element_type=jnp.float32)

    @pl.when(k == pl.num_programs(1) - 1)
    def _fin():
        o_ref[...] = jnp.tanh(acc_ref[...] + b_ref[...])


def pallas_image_proj(x, w, b, *, tk):
    Bm, K = x.shape
    Hp = w.shape[1]
    grid = (1, K // tk)
    return pl.pallas_call(
        _img_proj_kernel,
        out_shape=jax.ShapeDtypeStruct((Bm, Hp), jnp.float32),
        grid=grid,
        in_specs=[
            pl.BlockSpec((Bm, tk), lambda i, k: (i, k)),
            pl.BlockSpec((tk, Hp), lambda i, k: (k, 0)),
            pl.BlockSpec((1, Hp), lambda i, k: (0, 0)),
        ],
        out_specs=pl.BlockSpec((Bm, Hp), lambda i, k: (i, 0)),
        scratch_shapes=[pltpu.VMEM((Bm, Hp), jnp.float32)],
        compiler_params=pltpu.CompilerParams(
            dimension_semantics=("parallel", "arbitrary"),
            vmem_limit_bytes=64 * 1024 * 1024),
    )(x, w, b)


def _pair_fused_kernel(text_ref, vis_ref, mc_ref, mr_ref,
                       wh1_ref, bh1_ref, wt1_ref, bt1_ref,
                       wc_ref, bc_ref, wh2_ref, bh2_ref, wt2_ref, bt2_ref,
                       o1_ref, o2_ref, *, scale):
    """Fused PairGeometricHead + MultiPairsGeometricHead stand-ins (per batch).

    Block mixing, biaffine pair scoring and the masked relation-weighted
    refinement all stay in VMEM; the intermediate (Np,Np) logits never touch
    HBM between the two heads.
    """
    f32, bf16 = jnp.float32, jnp.bfloat16
    dn = (((1,), (1,)), ((), ()))                     # A @ B^T without transpose

    mc = mc_ref[0]                                    # (Np, 1)
    mr = mr_ref[0]                                    # (1, Np)
    x = vis_ref[0] + text_ref[0] * mc                 # mixed block features (Np, Hp)
    xb = x.astype(bf16)

    # --- first pair head (biaffine scoring) ---
    head1 = jnp.tanh(jnp.dot(xb, wh1_ref[...], preferred_element_type=f32)
                     + bh1_ref[...])
    tail1 = jnp.tanh(jnp.dot(xb, wt1_ref[...], preferred_element_type=f32)
                     + bt1_ref[...])
    logits1 = lax.dot_general(head1.astype(bf16), tail1.astype(bf16),
                              dimension_numbers=dn,
                              preferred_element_type=f32) * scale
    o1_ref[0] = logits1

    # --- multi-pairs refinement head ---
    pair_mask = mc * mr                               # (Np, Np)
    gate = jax.nn.sigmoid(logits1) * pair_mask
    ctx = jnp.dot(gate.astype(bf16), xb, preferred_element_type=f32)
    fused = jnp.tanh(jnp.dot((x + ctx).astype(bf16), wc_ref[...],
                             preferred_element_type=f32) + bc_ref[...])
    fb = fused.astype(bf16)
    head2 = jnp.tanh(jnp.dot(fb, wh2_ref[...], preferred_element_type=f32)
                     + bh2_ref[...])
    tail2 = jnp.tanh(jnp.dot(fb, wt2_ref[...], preferred_element_type=f32)
                     + bt2_ref[...])
    logits2 = lax.dot_general(head2.astype(bf16), tail2.astype(bf16),
                              dimension_numbers=dn,
                              preferred_element_type=f32) * scale
    o2_ref[0] = logits2


def pallas_pair_heads_fused(text_blk, vis_blk, mask_c, mask_r, params, *, scale):
    B, Np, Hp = text_blk.shape
    w_spec = pl.BlockSpec((Hp, Hp), lambda i: (0, 0))
    b_spec = pl.BlockSpec((1, Hp), lambda i: (0, 0))
    return pl.pallas_call(
        functools.partial(_pair_fused_kernel, scale=scale),
        out_shape=(jax.ShapeDtypeStruct((B, Np, Np), jnp.float32),
                   jax.ShapeDtypeStruct((B, Np, Np), jnp.float32)),
        grid=(B,),
        in_specs=[
            pl.BlockSpec((1, Np, Hp), lambda i: (i, 0, 0)),   # gathered text blk
            pl.BlockSpec((1, Np, Hp), lambda i: (i, 0, 0)),   # visual blk
            pl.BlockSpec((1, Np, 1), lambda i: (i, 0, 0)),    # block mask (col)
            pl.BlockSpec((1, 1, Np), lambda i: (i, 0, 0)),    # block mask (row)
            w_spec, b_spec, w_spec, b_spec,                   # pair head
            w_spec, b_spec, w_spec, b_spec, w_spec, b_spec,   # multi-pairs head
        ],
        out_specs=(pl.BlockSpec((1, Np, Np), lambda i: (i, 0, 0)),
                   pl.BlockSpec((1, Np, Np), lambda i: (i, 0, 0))),
        compiler_params=pltpu.CompilerParams(
            dimension_semantics=("parallel",),
            vmem_limit_bytes=64 * 1024 * 1024),
    )(text_blk, vis_blk, mask_c, mask_r,
      params["pg_wh"], params["pg_bh"], params["pg_wt"], params["pg_bt"],
      params["mp_wc"], params["mp_bc"], params["mp_wh"], params["mp_bh"],
      params["mp_wt"], params["mp_bt"])


# ----------------------------------------------------------------------------
# Model wrapper
# ----------------------------------------------------------------------------

class GeoLayoutLMVIEModelPallas:
    """JAX/Pallas re-implementation of GeoLayoutLMVIEModel.forward.

    use_inner_id = False path; dropout = eval-mode identity.
    """

    def __init__(self, *, vocab_size=100, hidden=32, num_class=8,
                 max_rank=16, n_blocks=8, img_c=3, img_hw=16, seed=0):
        self.hidden = hidden
        self.num_class = num_class
        self.n_blocks = n_blocks
        self.hp = _round_up(hidden, 128)        # lane-dense padded hidden
        self.cp = _round_up(num_class, 128)     # lane-dense padded classes
        self.scale = 1.0 / math.sqrt(float(hidden))

        key = jax.random.PRNGKey(seed)
        ks = jax.random.split(key, 16)
        s = 0.02

        def nrm(k, shape):
            return jax.random.normal(k, shape, dtype=jnp.float32) * s

        H, Hp, C, Cp = hidden, self.hp, num_class, self.cp
        K_img = img_c * img_hw * img_hw
        bf16 = jnp.bfloat16

        # Weights generated at real (unpadded) size, then zero-padded; padded
        # lanes therefore carry exactly-zero features through the whole net.
        self.params = {
            # backbone stand-in (text side)
            "word_emb": _pad_cols(nrm(ks[0], (vocab_size, H)), Hp),
            "rank_emb": _pad_cols(nrm(ks[2], (max_rank, H)), Hp),
            "rank_inner_emb": _pad_cols(nrm(ks[3], (max_rank, H)), Hp),
            "bbox_w": _pad_cols(nrm(ks[1], (4, H)), Hp).astype(bf16),
            "bbox_b": jnp.zeros((1, Hp), jnp.float32),
            "enc_w": _pad2(nrm(ks[4], (H, H)), Hp, Hp).astype(bf16),
            "enc_b": jnp.zeros((1, Hp), jnp.float32),
            # backbone stand-in (visual side)
            "img_w": _pad_cols(nrm(ks[5], (K_img, H)), Hp).astype(bf16),
            "img_b": jnp.zeros((1, Hp), jnp.float32),
            "blk_pos_emb": _pad_cols(nrm(ks[6], (n_blocks + 1, H)), Hp),
            # bio classifier (nn.Linear(hidden, num_class))
            "bio_w": _pad2(nrm(ks[7], (H, C)), Hp, Cp).astype(bf16),
            "bio_b": jnp.zeros((1, Cp), jnp.float32),
            # pair geometric head (stand-in)
            "pg_wh": _pad2(nrm(ks[8], (H, H)), Hp, Hp).astype(bf16),
            "pg_bh": jnp.zeros((1, Hp), jnp.float32),
            "pg_wt": _pad2(nrm(ks[9], (H, H)), Hp, Hp).astype(bf16),
            "pg_bt": jnp.zeros((1, Hp), jnp.float32),
            # multi pairs geometric head (stand-in)
            "mp_wc": _pad2(nrm(ks[10], (H, H)), Hp, Hp).astype(bf16),
            "mp_bc": jnp.zeros((1, Hp), jnp.float32),
            "mp_wh": _pad2(nrm(ks[11], (H, H)), Hp, Hp).astype(bf16),
            "mp_bh": jnp.zeros((1, Hp), jnp.float32),
            "mp_wt": _pad2(nrm(ks[12], (H, H)), Hp, Hp).astype(bf16),
            "mp_bt": jnp.zeros((1, Hp), jnp.float32),
        }

        self._forward_jit = jax.jit(self._forward_impl)

    # ------------------------------------------------------------------
    def _forward_impl(self, input_ids, image, bbox, bbox_4p_normalized,
                      attention_mask, first_token_idxes, first_token_idxes_mask,
                      line_rank_id, line_rank_inner_id):
        p = self.params
        Hp, Cp = self.hp, self.cp
        B, S = input_ids.shape
        Nblk = first_token_idxes.shape[1]
        Npad = _round_up(max(Nblk, 8), 128)

        # --- text path: embedding gathers (XLA glue) + fused Pallas kernel ---
        # TODO(synk): GeoLayoutLMModel backbone (BROS transformer + visual CNN)
        # source not provided; stand-in = embedding sums + dense GELU encoder.
        # bbox_4p_normalized is accepted (backbone signature) but unused here.
        emb = (jnp.take(p["word_emb"], input_ids, axis=0)
               + jnp.take(p["rank_emb"], line_rank_id, axis=0)
               + jnp.take(p["rank_inner_emb"], line_rank_inner_id, axis=0))
        M = B * S
        Mp = _round_up(M, 8) if M <= 256 else _round_up(M, 256)
        tm = min(Mp, 256)
        emb2d = _pad_rows(emb.reshape(M, Hp), Mp)
        bbox2d = _pad_rows(bbox.reshape(M, 4).astype(jnp.float32), Mp)
        mask2d = _pad_rows(attention_mask.reshape(M, 1).astype(jnp.float32), Mp)

        feat2d, bio2d = pallas_text_fused(
            emb2d, bbox2d, mask2d,
            p["bbox_w"], p["bbox_b"], p["enc_w"], p["enc_b"],
            p["bio_w"], p["bio_b"], tm=tm)
        text_mm_feat = feat2d[:M].reshape(B, S, Hp)
        logits4labeling = bio2d[:M].reshape(B, S, Cp)[:, :, :self.num_class]

        # --- visual path: K-tiled image projection (NCHW flattened row-major) ---
        img_flat = image.reshape(B, -1).astype(jnp.float32)
        K = img_flat.shape[1]
        tk = (512 if K % 512 == 0 else
              256 if K % 256 == 0 else
              128 if K % 128 == 0 else K)
        img_feat = pallas_image_proj(img_flat, p["img_w"], p["img_b"], tk=tk)
        vis_mm_feat = img_feat[:, None, :] + p["blk_pos_emb"][None, :, :]
        vis_blk = vis_mm_feat[:, 1:]                                 # [B,Nblk,Hp]

        # --- linking path: first-token gather (XLA glue) + fused pair heads ---
        text_blk = jnp.take_along_axis(
            text_mm_feat, first_token_idxes[:, :, None], axis=1)     # [B,Nblk,Hp]
        padN = Npad - Nblk
        text_blk_p = jnp.pad(text_blk, ((0, 0), (0, padN), (0, 0)))
        vis_blk_p = jnp.pad(vis_blk, ((0, 0), (0, padN), (0, 0)))
        mask_p = jnp.pad(first_token_idxes_mask.astype(jnp.float32),
                         ((0, 0), (0, padN)))
        mask_c = mask_p[:, :, None]
        mask_r = mask_p[:, None, :]

        # TODO(synk): exact PairGeometricHead / MultiPairsGeometricHead defs not
        # provided; stand-in = biaffine scoring + masked relation-weighted
        # refinement, fused in a single Pallas kernel.
        lg1_p, lg2_p = pallas_pair_heads_fused(
            text_blk_p, vis_blk_p, mask_c, mask_r, p, scale=self.scale)
        logits4linking = lg1_p[:, :Nblk, :Nblk]
        logits4linking_ref = lg2_p[:, :Nblk, :Nblk]
        # sigmoid(x) >= 0.5  <=>  x >= 0 : avoid a redundant full sigmoid pass.
        pred4linking = (logits4linking_ref >= 0.0).astype(jnp.float32)

        return {
            "logits4labeling": logits4labeling,
            "logits4linking_list": [logits4linking, logits4linking_ref],
            "pred4linking": pred4linking,
        }

    # ------------------------------------------------------------------
    def forward(self, *args):
        """Matches the reference forward(): returns only logits4labeling."""
        return self._forward_jit(*args)["logits4labeling"]

    def forward_full(self, *args):
        """All head outputs (what the reference builds internally)."""
        out = dict(self._forward_jit(*args))
        out["is_geo"] = True
        return out


# ----------------------------------------------------------------------------
# Demo
# ----------------------------------------------------------------------------

if __name__ == "__main__":
    B, S, N, H, C = 2, 16, 8, 32, 8
    IMG_C, IMG_HW = 3, 16
    VOCAB, MAX_RANK = 100, 16

    key = jax.random.PRNGKey(0)
    k = jax.random.split(key, 9)
    input_ids = jax.random.randint(k[0], (B, S), 0, VOCAB, dtype=jnp.int32)
    image = jax.random.normal(k[1], (B, IMG_C, IMG_HW, IMG_HW), dtype=jnp.float32)
    bbox = jax.random.uniform(k[2], (B, S, 4), dtype=jnp.float32)
    bbox_4p_normalized = jax.random.uniform(k[3], (B, S, 8), dtype=jnp.float32)
    attention_mask = jnp.ones((B, S), dtype=jnp.float32)
    first_token_idxes = jax.random.randint(k[4], (B, N), 0, S, dtype=jnp.int32)
    first_token_idxes_mask = (
        jax.random.uniform(k[5], (B, N)) > 0.2).astype(jnp.float32)
    line_rank_id = jax.random.randint(k[6], (B, S), 0, MAX_RANK, dtype=jnp.int32)
    line_rank_inner_id = jax.random.randint(k[7], (B, S), 0, MAX_RANK,
                                            dtype=jnp.int32)

    model = GeoLayoutLMVIEModelPallas(vocab_size=VOCAB, hidden=H, num_class=C,
                                      max_rank=MAX_RANK, n_blocks=N,
                                      img_c=IMG_C, img_hw=IMG_HW, seed=0)

    args = (input_ids, image, bbox, bbox_4p_normalized, attention_mask,
            first_token_idxes, first_token_idxes_mask,
            line_rank_id, line_rank_inner_id)

    outs = model.forward_full(*args)
    jax.block_until_ready(outs)
    assert outs["logits4labeling"].shape == (B, S, C)
    assert outs["logits4linking_list"][0].shape == (B, N, N)
    assert outs["logits4linking_list"][1].shape == (B, N, N)
    assert outs["pred4linking"].shape == (B, N, N)

    # Spec-compliant forward(): returns only logits4labeling.
    logits4labeling = model.forward(*args)
    jax.block_until_ready(logits4labeling)
    assert logits4labeling.shape == (B, S, C)

    print("KERNEL_OK")
</pallas_src>

<mosaic_0001>
module attributes {stable_mosaic.version = 11 : i64} {
  func.func @_img_proj_kernel(%arg0: i32, %arg1: i32, %arg2: memref<2x256xf32, #tpu.memory_space<vmem>>, %arg3: memref<256x128xbf16, #tpu.memory_space<vmem>>, %arg4: memref<1x128xf32, #tpu.memory_space<vmem>>, %arg5: memref<2x128xf32, #tpu.memory_space<vmem>>, %arg6: memref<2x128xf32, #tpu.memory_space<vmem>>) attributes {dimension_semantics = [#tpu.dimension_semantics<parallel>, #tpu.dimension_semantics<arbitrary>], iteration_bounds = array<i64: 1, 3>, scalar_prefetch = 0 : i64, scratch_operands = 1 : i64, tpu.core_type = #tpu.core_type<tc>, window_params = [{transform_indices = @transform_0, window_bounds = array<i64: 2, 256>}, {transform_indices = @transform_1, window_bounds = array<i64: 256, 128>}, {pipeline_mode = #tpu.pipeline_mode<synchronous>, transform_indices = @transform_2, window_bounds = array<i64: 1, 128>}, {transform_indices = @transform_3, window_bounds = array<i64: 2, 128>}]} {
    %c0_i32 = arith.constant 0 : i32
    %0 = arith.cmpi eq, %arg1, %c0_i32 : i32
    %1 = arith.extui %0 : i1 to i32
    %c0_i32_0 = arith.constant 0 : i32
    %2 = arith.cmpi ne, %1, %c0_i32_0 : i32
    scf.if %2 {
      %cst_9 = arith.constant 0.000000e+00 : f32
      %13 = vector.broadcast %cst_9 : f32 to vector<2x128xf32>
      %c0_10 = arith.constant 0 : index
      %c0_11 = arith.constant 0 : index
      %14 = vector.load %arg6[%c0_10, %c0_11] : memref<2x128xf32, #tpu.memory_space<vmem>>, vector<2x128xf32>
      tpu.vector_store %arg6[%c0_10, %c0_11], %13 {strides = array<i32>} : memref<2x128xf32, #tpu.memory_space<vmem>>, vector<2x128xf32>,
    } else {
    }
    %c0 = arith.constant 0 : index
    %c0_1 = arith.constant 0 : index
    %3 = vector.load %arg6[%c0, %c0_1] : memref<2x128xf32, #tpu.memory_space<vmem>>, vector<2x128xf32>
    %c0_2 = arith.constant 0 : index
    %c0_3 = arith.constant 0 : index
    %4 = vector.load %arg2[%c0_2, %c0_3] : memref<2x256xf32, #tpu.memory_space<vmem>>, vector<2x256xf32>
    %5 = arith.truncf %4 : vector<2x256xf32> to vector<2x256xbf16>
    %c0_4 = arith.constant 0 : index
    %c0_5 = arith.constant 0 : index
    %6 = vector.load %arg3[%c0_4, %c0_5] : memref<256x128xbf16, #tpu.memory_space<vmem>>, vector<256x128xbf16>
    %cst = arith.constant dense<0.000000e+00> : vector<2x128xf32>
    %7 = tpu.matmul %5, %6, %cst {dimension_numbers = #tpu.dot_dimension_numbers<[1], [0], [0], [1], [0, 0, 1, 1], [], []>} : vector<2x256xbf16>, vector<256x128xbf16>, vector<2x128xf32> -> vector<2x128xf32>
    %8 = arith.addf %3, %7 : vector<2x128xf32>
    %c0_6 = arith.constant 0 : index
    %c0_7 = arith.constant 0 : index
    %9 = vector.load %arg6[%c0_6, %c0_7] : memref<2x128xf32, #tpu.memory_space<vmem>>, vector<2x128xf32>
    tpu.vector_store %arg6[%c0_6, %c0_7], %8 {strides = array<i32>} : memref<2x128xf32, #tpu.memory_space<vmem>>, vector<2x128xf32>,
    %c2_i32 = arith.constant 2 : i32
    %10 = arith.cmpi eq, %arg1, %c2_i32 : i32
    %11 = arith.extui %10 : i1 to i32
    %c0_i32_8 = arith.constant 0 : i32
    %12 = arith.cmpi ne, %11, %c0_i32_8 : i32
    scf.if %12 {
      %c0_9 = arith.constant 0 : index
      %c0_10 = arith.constant 0 : index
      %13 = vector.load %arg6[%c0_9, %c0_10] : memref<2x128xf32, #tpu.memory_space<vmem>>, vector<2x128xf32>
      %c0_11 = arith.constant 0 : index
      %c0_12 = arith.constant 0 : index
      %14 = vector.load %arg4[%c0_11, %c0_12] : memref<1x128xf32, #tpu.memory_space<vmem>>, vector<1x128xf32>
      %15 = vector.broadcast %14 : vector<1x128xf32> to vector<2x128xf32>
      %16 = arith.addf %13, %15 : vector<2x128xf32>
      %17 = math.tanh %16 : vector<2x128xf32>
      %c0_13 = arith.constant 0 : index
      %c0_14 = arith.constant 0 : index
      %18 = vector.load %arg5[%c0_13, %c0_14] : memref<2x128xf32, #tpu.memory_space<vmem>>, vector<2x128xf32>
      tpu.vector_store %arg5[%c0_13, %c0_14], %17 {strides = array<i32>} : memref<2x128xf32, #tpu.memory_space<vmem>>, vector<2x128xf32>,
    } else {
    }
    return
  }
  func.func @transform_0(%arg0: i32, %arg1: i32) -> (i32, i32) {
    %c0_i32 = arith.constant 0 : i32
    return %arg0, %arg1 : i32, i32
  }
  func.func @transform_1(%arg0: i32, %arg1: i32) -> (i32, i32) {
    %c0_i32 = arith.constant 0 : i32
    %c0_i32_0 = arith.constant 0 : i32
    return %arg1, %c0_i32 : i32, i32
  }
  func.func @transform_2(%arg0: i32, %arg1: i32) -> (i32, i32) {
    %c0_i32 = arith.constant 0 : i32
    %c0_i32_0 = arith.constant 0 : i32
    %c0_i32_1 = arith.constant 0 : i32
    return %c0_i32, %c0_i32_0 : i32, i32
  }
  func.func @transform_3(%arg0: i32, %arg1: i32) -> (i32, i32) {
    %c0_i32 = arith.constant 0 : i32
    %c0_i32_0 = arith.constant 0 : i32
    return %arg0, %c0_i32 : i32, i32
  }
}

module attributes {stable_mosaic.version = 11 : i64} {
  func.func @_text_fused_kernel(%arg0: i32, %arg1: memref<32x128xf32, #tpu.memory_space<vmem>>, %arg2: memref<32x4xf32, #tpu.memory_space<vmem>>, %arg3: memref<32x1xf32, #tpu.memory_space<vmem>>, %arg4: memref<4x128xbf16, #tpu.memory_space<vmem>>, %arg5: memref<1x128xf32, #tpu.memory_space<vmem>>, %arg6: memref<128x128xbf16, #tpu.memory_space<vmem>>, %arg7: memref<1x128xf32, #tpu.memory_space<vmem>>, %arg8: memref<128x128xbf16, #tpu.memory_space<vmem>>, %arg9: memref<1x128xf32, #tpu.memory_space<vmem>>, %arg10: memref<32x128xf32, #tpu.memory_space<vmem>>, %arg11: memref<32x128xf32, #tpu.memory_space<vmem>>) attributes {dimension_semantics = [#tpu.dimension_semantics<parallel>], iteration_bounds = array<i64: 1>, scalar_prefetch = 0 : i64, scratch_operands = 0 : i64, tpu.core_type = #tpu.core_type<tc>, window_params = [{transform_indices = @transform_0, window_bounds = array<i64: 32, 128>}, {transform_indices = @transform_1, window_bounds = array<i64: 32, 4>}, {transform_indices = @transform_2, window_bounds = array<i64: 32, 1>}, {pipeline_mode = #tpu.pipeline_mode<synchronous>, transform_indices = @transform_3, window_bounds = array<i64: 4, 128>}, {pipeline_mode = #tpu.pipeline_mode<synchronous>, transform_indices = @transform_4, window_bounds = array<i64: 1, 128>}, {pipeline_mode = #tpu.pipeline_mode<synchronous>, transform_indices = @transform_5, window_bounds = array<i64: 128, 128>}, {pipeline_mode = #tpu.pipeline_mode<synchronous>, transform_indices = @transform_6, window_bounds = array<i64: 1, 128>}, {pipeline_mode = #tpu.pipeline_mode<synchronous>, transform_indices = @transform_7, window_bounds = array<i64: 128, 128>}, {pipeline_mode = #tpu.pipeline_mode<synchronous>, transform_indices = @transform_8, window_bounds = array<i64: 1, 128>}, {transform_indices = @transform_9, window_bounds = array<i64: 32, 128>}, {transform_indices = @transform_10, window_bounds = array<i64: 32, 128>}]} {
    %c0 = arith.constant 0 : index
    %c0_0 = arith.constant 0 : index
    %0 = vector.load %arg2[%c0, %c0_0] : memref<32x4xf32, #tpu.memory_space<vmem>>, vector<32x4xf32>
    %1 = arith.truncf %0 : vector<32x4xf32> to vector<32x4xbf16>
    %c0_1 = arith.constant 0 : index
    %c0_2 = arith.constant 0 : index
    %2 = vector.load %arg4[%c0_1, %c0_2] : memref<4x128xbf16, #tpu.memory_space<vmem>>, vector<4x128xbf16>
    %cst = arith.constant dense<0.000000e+00> : vector<32x128xf32>
    %3 = tpu.matmul %1, %2, %cst {dimension_numbers = #tpu.dot_dimension_numbers<[1], [0], [0], [1], [0, 0, 1, 1], [], []>} : vector<32x4xbf16>, vector<4x128xbf16>, vector<32x128xf32> -> vector<32x128xf32>
    %c0_3 = arith.constant 0 : index
    %c0_4 = arith.constant 0 : index
    %4 = vector.load %arg5[%c0_3, %c0_4] : memref<1x128xf32, #tpu.memory_space<vmem>>, vector<1x128xf32>
    %5 = vector.broadcast %4 : vector<1x128xf32> to vector<32x128xf32>
    %6 = arith.addf %3, %5 : vector<32x128xf32>
    %c0_5 = arith.constant 0 : index
    %c0_6 = arith.constant 0 : index
    %7 = vector.load %arg1[%c0_5, %c0_6] : memref<32x128xf32, #tpu.memory_space<vmem>>, vector<32x128xf32>
    %8 = arith.addf %7, %6 : vector<32x128xf32>
    %c0_7 = arith.constant 0 : index
    %c0_8 = arith.constant 0 : index
    %9 = vector.load %arg3[%c0_7, %c0_8] : memref<32x1xf32, #tpu.memory_space<vmem>>, vector<32x1xf32>
    %10 = vector.broadcast %9 : vector<32x1xf32> to vector<32x128xf32>
    %11 = arith.mulf %8, %10 : vector<32x128xf32>
    %12 = arith.truncf %11 : vector<32x128xf32> to vector<32x128xbf16>
    %c0_9 = arith.constant 0 : index
    %c0_10 = arith.constant 0 : index
    %13 = vector.load %arg6[%c0_9, %c0_10] : memref<128x128xbf16, #tpu.memory_space<vmem>>, vector<128x128xbf16>
    %cst_11 = arith.constant dense<0.000000e+00> : vector<32x128xf32>
    %14 = tpu.matmul %12, %13, %cst_11 {dimension_numbers = #tpu.dot_dimension_numbers<[1], [0], [0], [1], [0, 0, 1, 1], [], []>} : vector<32x128xbf16>, vector<128x128xbf16>, vector<32x128xf32> -> vector<32x128xf32>
    %c0_12 = arith.constant 0 : index
    %c0_13 = arith.constant 0 : index
    %15 = vector.load %arg7[%c0_12, %c0_13] : memref<1x128xf32, #tpu.memory_space<vmem>>, vector<1x128xf32>
    %16 = vector.broadcast %15 : vector<1x128xf32> to vector<32x128xf32>
    %17 = arith.addf %14, %16 : vector<32x128xf32>
    %18 = arith.mulf %17, %17 : vector<32x128xf32>
    %19 = arith.mulf %17, %18 : vector<32x128xf32>
    %cst_14 = arith.constant 4.471500e-02 : f32
    %20 = vector.broadcast %cst_14 : f32 to vector<32x128xf32>
    %21 = arith.mulf %20, %19 : vector<32x128xf32>
    %22 = arith.addf %17, %21 : vector<32x128xf32>
    %cst_15 = arith.constant 0.797884583 : f32
    %23 = vector.broadcast %cst_15 : f32 to vector<32x128xf32>
    %24 = arith.mulf %23, %22 : vector<32x128xf32>
    %25 = math.tanh %24 : vector<32x128xf32>
    %cst_16 = arith.constant 1.000000e+00 : f32
    %26 = vector.broadcast %cst_16 : f32 to vector<32x128xf32>
    %27 = arith.addf %26, %25 : vector<32x128xf32>
    %cst_17 = arith.constant 5.000000e-01 : f32
    %28 = vector.broadcast %cst_17 : f32 to vector<32x128xf32>
    %29 = arith.mulf %28, %27 : vector<32x128xf32>
    %30 = arith.mulf %17, %29 : vector<32x128xf32>
    %c0_18 = arith.constant 0 : index
    %c0_19 = arith.constant 0 : index
    %31 = vector.load %arg10[%c0_18, %c0_19] : memref<32x128xf32, #tpu.memory_space<vmem>>, vector<32x128xf32>
    tpu.vector_store %arg10[%c0_18, %c0_19], %30 {strides = array<i32>} : memref<32x128xf32, #tpu.memory_space<vmem>>, vector<32x128xf32>,
    %32 = arith.truncf %30 : vector<32x128xf32> to vector<32x128xbf16>
    %c0_20 = arith.constant 0 : index
    %c0_21 = arith.constant 0 : index
    %33 = vector.load %arg8[%c0_20, %c0_21] : memref<128x128xbf16, #tpu.memory_space<vmem>>, vector<128x128xbf16>
    %cst_22 = arith.constant dense<0.000000e+00> : vector<32x128xf32>
    %34 = tpu.matmul %32, %33, %cst_22 {dimension_numbers = #tpu.dot_dimension_numbers<[1], [0], [0], [1], [0, 0, 1, 1], [], []>} : vector<32x128xbf16>, vector<128x128xbf16>, vector<32x128xf32> -> vector<32x128xf32>
    %c0_23 = arith.constant 0 : index
    %c0_24 = arith.constant 0 : index
    %35 = vector.load %arg9[%c0_23, %c0_24] : memref<1x128xf32, #tpu.memory_space<vmem>>, vector<1x128xf32>
    %36 = vector.broadcast %35 : vector<1x128xf32> to vector<32x128xf32>
    %37 = arith.addf %34, %36 : vector<32x128xf32>
    %c0_25 = arith.constant 0 : index
    %c0_26 = arith.constant 0 : index
    %38 = vector.load %arg11[%c0_25, %c0_26] : memref<32x128xf32, #tpu.memory_space<vmem>>, vector<32x128xf32>
    tpu.vector_store %arg11[%c0_25, %c0_26], %37 {strides = array<i32>} : memref<32x128xf32, #tpu.memory_space<vmem>>, vector<32x128xf32>,
    return
  }
  func.func @transform_0(%arg0: i32) -> (i32, i32) {
    %c0_i32 = arith.constant 0 : i32
    %c0_i32_0 = arith.constant 0 : i32
    return %arg0, %c0_i32 : i32, i32
  }
  func.func @transform_1(%arg0: i32) -> (i32, i32) {
    %c0_i32 = arith.constant 0 : i32
    %c0_i32_0 = arith.constant 0 : i32
    return %arg0, %c0_i32 : i32, i32
  }
  func.func @transform_2(%arg0: i32) -> (i32, i32) {
    %c0_i32 = arith.constant 0 : i32
    %c0_i32_0 = arith.constant 0 : i32
    return %arg0, %c0_i32 : i32, i32
  }
  func.func @transform_3(%arg0: i32) -> (i32, i32) {
    %c0_i32 = arith.constant 0 : i32
    %c0_i32_0 = arith.constant 0 : i32
    %c0_i32_1 = arith.constant 0 : i32
    return %c0_i32, %c0_i32_0 : i32, i32
  }
  func.func @transform_4(%arg0: i32) -> (i32, i32) {
    %c0_i32 = arith.constant 0 : i32
    %c0_i32_0 = arith.constant 0 : i32
    %c0_i32_1 = arith.constant 0 : i32
    return %c0_i32, %c0_i32_0 : i32, i32
  }
  func.func @transform_5(%arg0: i32) -> (i32, i32) {
    %c0_i32 = arith.constant 0 : i32
    %c0_i32_0 = arith.constant 0 : i32
    %c0_i32_1 = arith.constant 0 : i32
    return %c0_i32, %c0_i32_0 : i32, i32
  }
  func.func @transform_6(%arg0: i32) -> (i32, i32) {
    %c0_i32 = arith.constant 0 : i32
    %c0_i32_0 = arith.constant 0 : i32
    %c0_i32_1 = arith.constant 0 : i32
    return %c0_i32, %c0_i32_0 : i32, i32
  }
  func.func @transform_7(%arg0: i32) -> (i32, i32) {
    %c0_i32 = arith.constant 0 : i32
    %c0_i32_0 = arith.constant 0 : i32
    %c0_i32_1 = arith.constant 0 : i32
    return %c0_i32, %c0_i32_0 : i32, i32
  }
  func.func @transform_8(%arg0: i32) -> (i32, i32) {
    %c0_i32 = arith.constant 0 : i32
    %c0_i32_0 = arith.constant 0 : i32
    %c0_i32_1 = arith.constant 0 : i32
    return %c0_i32, %c0_i32_0 : i32, i32
  }
  func.func @transform_9(%arg0: i32) -> (i32, i32) {
    %c0_i32 = arith.constant 0 : i32
    %c0_i32_0 = arith.constant 0 : i32
    return %arg0, %c0_i32 : i32, i32
  }
  func.func @transform_10(%arg0: i32) -> (i32, i32) {
    %c0_i32 = arith.constant 0 : i32
    %c0_i32_0 = arith.constant 0 : i32
    return %arg0, %c0_i32 : i32, i32
  }
}

module attributes {stable_mosaic.version = 11 : i64} {
  func.func @_pair_fused_kernel(%arg0: i32, %arg1: memref<1x128x128xf32, #tpu.memory_space<vmem>>, %arg2: memref<1x128x128xf32, #tpu.memory_space<vmem>>, %arg3: memref<1x128x1xf32, #tpu.memory_space<vmem>>, %arg4: memref<1x1x128xf32, #tpu.memory_space<vmem>>, %arg5: memref<128x128xbf16, #tpu.memory_space<vmem>>, %arg6: memref<1x128xf32, #tpu.memory_space<vmem>>, %arg7: memref<128x128xbf16, #tpu.memory_space<vmem>>, %arg8: memref<1x128xf32, #tpu.memory_space<vmem>>, %arg9: memref<128x128xbf16, #tpu.memory_space<vmem>>, %arg10: memref<1x128xf32, #tpu.memory_space<vmem>>, %arg11: memref<128x128xbf16, #tpu.memory_space<vmem>>, %arg12: memref<1x128xf32, #tpu.memory_space<vmem>>, %arg13: memref<128x128xbf16, #tpu.memory_space<vmem>>, %arg14: memref<1x128xf32, #tpu.memory_space<vmem>>, %arg15: memref<1x128x128xf32, #tpu.memory_space<vmem>>, %arg16: memref<1x128x128xf32, #tpu.memory_space<vmem>>) attributes {dimension_semantics = [#tpu.dimension_semantics<parallel>], iteration_bounds = array<i64: 2>, scalar_prefetch = 0 : i64, scratch_operands = 0 : i64, tpu.core_type = #tpu.core_type<tc>, window_params = [{transform_indices = @transform_0, window_bounds = array<i64: 1, 128, 128>}, {transform_indices = @transform_1, window_bounds = array<i64: 1, 128, 128>}, {transform_indices = @transform_2, window_bounds = array<i64: 1, 128, 1>}, {transform_indices = @transform_3, window_bounds = array<i64: 1, 1, 128>}, {pipeline_mode = #tpu.pipeline_mode<synchronous>, transform_indices = @transform_4, window_bounds = array<i64: 128, 128>}, {pipeline_mode = #tpu.pipeline_mode<synchronous>, transform_indices = @transform_5, window_bounds = array<i64: 1, 128>}, {pipeline_mode = #tpu.pipeline_mode<synchronous>, transform_indices = @transform_6, window_bounds = array<i64: 128, 128>}, {pipeline_mode = #tpu.pipeline_mode<synchronous>, transform_indices = @transform_7, window_bounds = array<i64: 1, 128>}, {pipeline_mode = #tpu.pipeline_mode<synchronous>, transform_indices = @transform_8, window_bounds = array<i64: 128, 128>}, {pipeline_mode = #tpu.pipeline_mode<synchronous>, transform_indices = @transform_9, window_bounds = array<i64: 1, 128>}, {pipeline_mode = #tpu.pipeline_mode<synchronous>, transform_indices = @transform_10, window_bounds = array<i64: 128, 128>}, {pipeline_mode = #tpu.pipeline_mode<synchronous>, transform_indices = @transform_11, window_bounds = array<i64: 1, 128>}, {pipeline_mode = #tpu.pipeline_mode<synchronous>, transform_indices = @transform_12, window_bounds = array<i64: 128, 128>}, {pipeline_mode = #tpu.pipeline_mode<synchronous>, transform_indices = @transform_13, window_bounds = array<i64: 1, 128>}, {transform_indices = @transform_14, window_bounds = array<i64: 1, 128, 128>}, {transform_indices = @transform_15, window_bounds = array<i64: 1, 128, 128>}]} {
    %c0 = arith.constant 0 : index
    %c0_0 = arith.constant 0 : index
    %c0_1 = arith.constant 0 : index
    %0 = vector.load %arg3[%c0, %c0_0, %c0_1] : memref<1x128x1xf32, #tpu.memory_space<vmem>>, vector<1x128x1xf32>
    %1 = vector.shape_cast %0 : vector<1x128x1xf32> to vector<128x1xf32>
    %c0_2 = arith.constant 0 : index
    %c0_3 = arith.constant 0 : index
    %c0_4 = arith.constant 0 : index
    %2 = vector.load %arg4[%c0_2, %c0_3, %c0_4] : memref<1x1x128xf32, #tpu.memory_space<vmem>>, vector<1x1x128xf32>
    %3 = vector.shape_cast %2 : vector<1x1x128xf32> to vector<1x128xf32>
    %c0_5 = arith.constant 0 : index
    %c0_6 = arith.constant 0 : index
    %c0_7 = arith.constant 0 : index
    %4 = vector.load %arg2[%c0_5, %c0_6, %c0_7] : memref<1x128x128xf32, #tpu.memory_space<vmem>>, vector<1x128x128xf32>
    %5 = vector.shape_cast %4 : vector<1x128x128xf32> to vector<128x128xf32>
    %c0_8 = arith.constant 0 : index
    %c0_9 = arith.constant 0 : index
    %c0_10 = arith.constant 0 : index
    %6 = vector.load %arg1[%c0_8, %c0_9, %c0_10] : memref<1x128x128xf32, #tpu.memory_space<vmem>>, vector<1x128x128xf32>
    %7 = vector.shape_cast %6 : vector<1x128x128xf32> to vector<128x128xf32>
    %8 = vector.broadcast %1 : vector<128x1xf32> to vector<128x128xf32>
    %9 = arith.mulf %7, %8 : vector<128x128xf32>
    %10 = arith.addf %5, %9 : vector<128x128xf32>
    %11 = arith.truncf %10 : vector<128x128xf32> to vector<128x128xbf16>
    %c0_11 = arith.constant 0 : index
    %c0_12 = arith.constant 0 : index
    %12 = vector.load %arg5[%c0_11, %c0_12] : memref<128x128xbf16, #tpu.memory_space<vmem>>, vector<128x128xbf16>
    %cst = arith.constant dense<0.000000e+00> : vector<128x128xf32>
    %13 = tpu.matmul %11, %12, %cst {dimension_numbers = #tpu.dot_dimension_numbers<[1], [0], [0], [1], [0, 0, 1, 1], [], []>} : vector<128x128xbf16>, vector<128x128xbf16>, vector<128x128xf32> -> vector<128x128xf32>
    %c0_13 = arith.constant 0 : index
    %c0_14 = arith.constant 0 : index
    %14 = vector.load %arg6[%c0_13, %c0_14] : memref<1x128xf32, #tpu.memory_space<vmem>>, vector<1x128xf32>
    %15 = vector.broadcast %14 : vector<1x128xf32> to vector<128x128xf32>
    %16 = arith.addf %13, %15 : vector<128x128xf32>
    %17 = math.tanh %16 : vector<128x128xf32>
    %c0_15 = arith.constant 0 : index
    %c0_16 = arith.constant 0 : index
    %18 = vector.load %arg7[%c0_15, %c0_16] : memref<128x128xbf16, #tpu.memory_space<vmem>>, vector<128x128xbf16>
    %cst_17 = arith.constant dense<0.000000e+00> : vector<128x128xf32>
    %19 = tpu.matmul %11, %18, %cst_17 {dimension_numbers = #tpu.dot_dimension_numbers<[1], [0], [0], [1], [0, 0, 1, 1], [], []>} : vector<128x128xbf16>, vector<128x128xbf16>, vector<128x128xf32> -> vector<128x128xf32>
    %c0_18 = arith.constant 0 : index
    %c0_19 = arith.constant 0 : index
    %20 = vector.load %arg8[%c0_18, %c0_19] : memref<1x128xf32, #tpu.memory_space<vmem>>, vector<1x128xf32>
    %21 = vector.broadcast %20 : vector<1x128xf32> to vector<128x128xf32>
    %22 = arith.addf %19, %21 : vector<128x128xf32>
    %23 = math.tanh %22 : vector<128x128xf32>
    %24 = arith.truncf %17 : vector<128x128xf32> to vector<128x128xbf16>
    %25 = arith.truncf %23 : vector<128x128xf32> to vector<128x128xbf16>
    %cst_20 = arith.constant dense<0.000000e+00> : vector<128x128xf32>
    %26 = tpu.matmul %24, %25, %cst_20 {dimension_numbers = #tpu.dot_dimension_numbers<[1], [1], [0], [0], [0, 0, 1, 0], [], []>} : vector<128x128xbf16>, vector<128x128xbf16>, vector<128x128xf32> -> vector<128x128xf32>
    %cst_21 = arith.constant 0.176776692 : f32
    %27 = vector.broadcast %cst_21 : f32 to vector<128x128xf32>
    %28 = arith.mulf %26, %27 : vector<128x128xf32>
    %c0_22 = arith.constant 0 : index
    %c0_23 = arith.constant 0 : index
    %c0_24 = arith.constant 0 : index
    %29 = vector.load %arg15[%c0_22, %c0_23, %c0_24] : memref<1x128x128xf32, #tpu.memory_space<vmem>>, vector<1x128x128xf32>
    %30 = vector.shape_cast %29 : vector<1x128x128xf32> to vector<128x128xf32>
    %31 = vector.shape_cast %28 : vector<128x128xf32> to vector<1x128x128xf32>
    tpu.vector_store %arg15[%c0_22, %c0_23, %c0_24], %31 {strides = array<i32>} : memref<1x128x128xf32, #tpu.memory_space<vmem>>, vector<1x128x128xf32>,
    %32 = vector.broadcast %1 : vector<128x1xf32> to vector<128x128xf32>
    %33 = vector.broadcast %3 : vector<1x128xf32> to vector<128x128xf32>
    %34 = arith.mulf %32, %33 : vector<128x128xf32>
    %35 = arith.negf %28 : vector<128x128xf32>
    %36 = math.exp %35 : vector<128x128xf32>
    %cst_25 = arith.constant 1.000000e+00 : f32
    %37 = vector.broadcast %cst_25 : f32 to vector<128x128xf32>
    %38 = arith.addf %37, %36 : vector<128x128xf32>
    %39 = arith.divf %37, %38 : vector<128x128xf32>
    %40 = arith.mulf %39, %34 : vector<128x128xf32>
    %41 = arith.truncf %40 : vector<128x128xf32> to vector<128x128xbf16>
    %cst_26 = arith.constant dense<0.000000e+00> : vector<128x128xf32>
    %42 = tpu.matmul %41, %11, %cst_26 {dimension_numbers = #tpu.dot_dimension_numbers<[1], [0], [0], [1], [0, 0, 1, 1], [], []>} : vector<128x128xbf16>, vector<128x128xbf16>, vector<128x128xf32> -> vector<128x128xf32>
    %43 = arith.addf %10, %42 : vector<128x128xf32>
    %44 = arith.truncf %43 : vector<128x128xf32> to vector<128x128xbf16>
    %c0_27 = arith.constant 0 : index
    %c0_28 = arith.constant 0 : index
    %45 = vector.load %arg9[%c0_27, %c0_28] : memref<128x128xbf16, #tpu.memory_space<vmem>>, vector<128x128xbf16>
    %cst_29 = arith.constant dense<0.000000e+00> : vector<128x128xf32>
    %46 = tpu.matmul %44, %45, %cst_29 {dimension_numbers = #tpu.dot_dimension_numbers<[1], [0], [0], [1], [0, 0, 1, 1], [], []>} : vector<128x128xbf16>, vector<128x128xbf16>, vector<128x128xf32> -> vector<128x128xf32>
    %c0_30 = arith.constant 0 : index
    %c0_31 = arith.constant 0 : index
    %47 = vector.load %arg10[%c0_30, %c0_31] : memref<1x128xf32, #tpu.memory_space<vmem>>, vector<1x128xf32>
    %48 = vector.broadcast %47 : vector<1x128xf32> to vector<128x128xf32>
    %49 = arith.addf %46, %48 : vector<128x128xf32>
    %50 = math.tanh %49 : vector<128x128xf32>
    %51 = arith.truncf %50 : vector<128x128xf32> to vector<128x128xbf16>
    %c0_32 = arith.constant 0 : index
    %c0_33 = arith.constant 0 : index
    %52 = vector.load %arg11[%c0_32, %c0_33] : memref<128x128xbf16, #tpu.memory_space<vmem>>, vector<128x128xbf16>
    %cst_34 = arith.constant dense<0.000000e+00> : vector<128x128xf32>
    %53 = tpu.matmul %51, %52, %cst_34 {dimension_numbers = #tpu.dot_dimension_numbers<[1], [0], [0], [1], [0, 0, 1, 1], [], []>} : vector<128x128xbf16>, vector<128x128xbf16>, vector<128x128xf32> -> vector<128x128xf32>
    %c0_35 = arith.constant 0 : index
    %c0_36 = arith.constant 0 : index
    %54 = vector.load %arg12[%c0_35, %c0_36] : memref<1x128xf32, #tpu.memory_space<vmem>>, vector<1x128xf32>
    %55 = vector.broadcast %54 : vector<1x128xf32> to vector<128x128xf32>
    %56 = arith.addf %53, %55 : vector<128x128xf32>
    %57 = math.tanh %56 : vector<128x128xf32>
    %c0_37 = arith.constant 0 : index
    %c0_38 = arith.constant 0 : index
    %58 = vector.load %arg13[%c0_37, %c0_38] : memref<128x128xbf16, #tpu.memory_space<vmem>>, vector<128x128xbf16>
    %cst_39 = arith.constant dense<0.000000e+00> : vector<128x128xf32>
    %59 = tpu.matmul %51, %58, %cst_39 {dimension_numbers = #tpu.dot_dimension_numbers<[1], [0], [0], [1], [0, 0, 1, 1], [], []>} : vector<128x128xbf16>, vector<128x128xbf16>, vector<128x128xf32> -> vector<128x128xf32>
    %c0_40 = arith.constant 0 : index
    %c0_41 = arith.constant 0 : index
    %60 = vector.load %arg14[%c0_40, %c0_41] : memref<1x128xf32, #tpu.memory_space<vmem>>, vector<1x128xf32>
    %61 = vector.broadcast %60 : vector<1x128xf32> to vector<128x128xf32>
    %62 = arith.addf %59, %61 : vector<128x128xf32>
    %63 = math.tanh %62 : vector<128x128xf32>
    %64 = arith.truncf %57 : vector<128x128xf32> to vector<128x128xbf16>
    %65 = arith.truncf %63 : vector<128x128xf32> to vector<128x128xbf16>
    %cst_42 = arith.constant dense<0.000000e+00> : vector<128x128xf32>
    %66 = tpu.matmul %64, %65, %cst_42 {dimension_numbers = #tpu.dot_dimension_numbers<[1], [1], [0], [0], [0, 0, 1, 0], [], []>} : vector<128x128xbf16>, vector<128x128xbf16>, vector<128x128xf32> -> vector<128x128xf32>
    %cst_43 = arith.constant 0.176776692 : f32
    %67 = vector.broadcast %cst_43 : f32 to vector<128x128xf32>
    %68 = arith.mulf %66, %67 : vector<128x128xf32>
    %c0_44 = arith.constant 0 : index
    %c0_45 = arith.constant 0 : index
    %c0_46 = arith.constant 0 : index
    %69 = vector.load %arg16[%c0_44, %c0_45, %c0_46] : memref<1x128x128xf32, #tpu.memory_space<vmem>>, vector<1x128x128xf32>
    %70 = vector.shape_cast %69 : vector<1x128x128xf32> to vector<128x128xf32>
    %71 = vector.shape_cast %68 : vector<128x128xf32> to vector<1x128x128xf32>
    tpu.vector_store %arg16[%c0_44, %c0_45, %c0_46], %71 {strides = array<i32>} : memref<1x128x128xf32, #tpu.memory_space<vmem>>, vector<1x128x128xf32>,
    return
  }
  func.func @transform_0(%arg0: i32) -> (i32, i32, i32) {
    %c0_i32 = arith.constant 0 : i32
    %c0_i32_0 = arith.constant 0 : i32
    %c0_i32_1 = arith.constant 0 : i32
    return %arg0, %c0_i32, %c0_i32_0 : i32, i32, i32
  }
  func.func @transform_1(%arg0: i32) -> (i32, i32, i32) {
    %c0_i32 = arith.constant 0 : i32
    %c0_i32_0 = arith.constant 0 : i32
    %c0_i32_1 = arith.constant 0 : i32
    return %arg0, %c0_i32, %c0_i32_0 : i32, i32, i32
  }
  func.func @transform_2(%arg0: i32) -> (i32, i32, i32) {
    %c0_i32 = arith.constant 0 : i32
    %c0_i32_0 = arith.constant 0 : i32
    %c0_i32_1 = arith.constant 0 : i32
    return %arg0, %c0_i32, %c0_i32_0 : i32, i32, i32
  }
  func.func @transform_3(%arg0: i32) -> (i32, i32, i32) {
    %c0_i32 = arith.constant 0 : i32
    %c0_i32_0 = arith.constant 0 : i32
    %c0_i32_1 = arith.constant 0 : i32
    return %arg0, %c0_i32, %c0_i32_0 : i32, i32, i32
  }
  func.func @transform_4(%arg0: i32) -> (i32, i32) {
    %c0_i32 = arith.constant 0 : i32
    %c0_i32_0 = arith.constant 0 : i32
    %c0_i32_1 = arith.constant 0 : i32
    return %c0_i32, %c0_i32_0 : i32, i32
  }
  func.func @transform_5(%arg0: i32) -> (i32, i32) {
    %c0_i32 = arith.constant 0 : i32
    %c0_i32_0 = arith.constant 0 : i32
    %c0_i32_1 = arith.constant 0 : i32
    return %c0_i32, %c0_i32_0 : i32, i32
  }
  func.func @transform_6(%arg0: i32) -> (i32, i32) {
    %c0_i32 = arith.constant 0 : i32
    %c0_i32_0 = arith.constant 0 : i32
    %c0_i32_1 = arith.constant 0 : i32
    return %c0_i32, %c0_i32_0 : i32, i32
  }
  func.func @transform_7(%arg0: i32) -> (i32, i32) {
    %c0_i32 = arith.constant 0 : i32
    %c0_i32_0 = arith.constant 0 : i32
    %c0_i32_1 = arith.constant 0 : i32
    return %c0_i32, %c0_i32_0 : i32, i32
  }
  func.func @transform_8(%arg0: i32) -> (i32, i32) {
    %c0_i32 = arith.constant 0 : i32
    %c0_i32_0 = arith.constant 0 : i32
    %c0_i32_1 = arith.constant 0 : i32
    return %c0_i32, %c0_i32_0 : i32, i32
  }
  func.func @transform_9(%arg0: i32) -> (i32, i32) {
    %c0_i32 = arith.constant 0 : i32
    %c0_i32_0 = arith.constant 0 : i32
    %c0_i32_1 = arith.constant 0 : i32
    return %c0_i32, %c0_i32_0 : i32, i32
  }
  func.func @transform_10(%arg0: i32) -> (i32, i32) {
    %c0_i32 = arith.constant 0 : i32
    %c0_i32_0 = arith.constant 0 : i32
    %c0_i32_1 = arith.constant 0 : i32
    return %c0_i32, %c0_i32_0 : i32, i32
  }
  func.func @transform_11(%arg0: i32) -> (i32, i32) {
    %c0_i32 = arith.constant 0 : i32
    %c0_i32_0 = arith.constant 0 : i32
    %c0_i32_1 = arith.constant 0 : i32
    return %c0_i32, %c0_i32_0 : i32, i32
  }
  func.func @transform_12(%arg0: i32) -> (i32, i32) {
    %c0_i32 = arith.constant 0 : i32
    %c0_i32_0 = arith.constant 0 : i32
    %c0_i32_1 = arith.constant 0 : i32
    return %c0_i32, %c0_i32_0 : i32, i32
  }
  func.func @transform_13(%arg0: i32) -> (i32, i32) {
    %c0_i32 = arith.constant 0 : i32
    %c0_i32_0 = arith.constant 0 : i32
    %c0_i32_1 = arith.constant 0 : i32
    return %c0_i32, %c0_i32_0 : i32, i32
  }
  func.func @transform_14(%arg0: i32) -> (i32, i32, i32) {
    %c0_i32 = arith.constant 0 : i32
    %c0_i32_0 = arith.constant 0 : i32
    %c0_i32_1 = arith.constant 0 : i32
    return %arg0, %c0_i32, %c0_i32_0 : i32, i32, i32
  }
  func.func @transform_15(%arg0: i32) -> (i32, i32, i32) {
    %c0_i32 = arith.constant 0 : i32
    %c0_i32_0 = arith.constant 0 : i32
    %c0_i32_1 = arith.constant 0 : i32
    return %arg0, %c0_i32, %c0_i32_0 : i32, i32, i32
  }
}

</mosaic_0001>

<bundles_post_ra>
// kernel: _forward_impl.4
= control target key start
LH: loop header
LB: loop body
LE: loop exit
PB: predicated region body
PF: predicated region fallthrough
CT: control target
= control target key end

     0   :  { %8 = vsyncpa [#allocation4], 0  ;;  %s886_s0 = inlined_call_operand.vmem [shape: f32[2,768], index: 0, kind: input, shape index: {}]   ;;  %s887_s1 = inlined_call_operand.hbm [shape: bf16[768,128], index: 1, kind: input, shape index: {}]   ;;  %s888_s2 = inlined_call_operand.vmem [shape: f32[1,128], index: 2, kind: input, shape index: {}]   ;;  %s889_s3 = inlined_call_operand.vmem [shape: f32[2,128], index: 3, kind: output, shape index: {}]  }
   0x1   :  { %10 = vsyncpa [#allocation4 + $0x1], 0  ;;  %s773_s12 = smov 0   ;;  %s775_s13 = smov 0  }
   0x2   :  { %s777_s14 = smov 0   ;;  %s779_s15 = smov 0  }
   0x3   :  { %s781_s16 = smov 0   ;;  %s783_s17 = smov 0  }
   0x4 LB: > { %s511_s18 = sadd.s32 4294967295, %s748_s17   ;;  %s25_s19 = sadd.s32 1, %s744_s16  ;;  %s748_s17 = sphi %s783_s17, %s16_s17   ;;  %s744_s16 = sphi %s781_s16, %s896_s16   ;;  %s740_s15 = sphi %s779_s15, %s895_s15   ;;  %s736_s14 = sphi %s777_s14, %s894_s14   ;;  %s732_s13 = sphi %s775_s13, %s893_s13   ;;  %s728_s12 = sphi %s773_s12, %s892_s12  }
   0x5   : > { %p26_p0 = scmp.ge.s32.totalorder %s25_s19, 3  ;;  %s63_s20 = sadd.s32 1, %s736_s14 }
   0x6   : > { %p70_p1 = scmp.ne.s32.totalorder %s736_s14, %s732_s13  ;;  %p71_p2 = scmp.eq.s32.totalorder %s748_s17, 0 }
   0x7   : > { %s898_s19 = smov (%p26_p0, %s25_s19), 0  ;;  %p76_p4 = scmp.ne.s32.totalorder %s732_s13, %s728_s12 }
   0x8   : > { %p809_p3 = por %p71_p2, %p70_p1  ;;  %s60_s22 = ssub.s32 %s744_s16, %s898_s19 }
   0x9   : > { %p77_p5 = scmp.eq.s32.totalorder %s511_s18, 0  ;;  %p61_p6 = scmp.eq.s32.totalorder %s60_s22, 0 }
   0xa   : > { %p613_p8 = scmp.lt.s32.totalorder %s748_s17, 3  ;;  %s163_s25 = sand.u32 1, %s736_s14  }
   0xb   : > { %p816_p7 = por %p77_p5, %p76_p4  ;;  %s590_s26 = sshll.u32 %s744_s16, 7 }
   0xc   : > { %s822_s24 = scalar_select %p61_p6, %s736_s14, %s63_s20  }
   0xd   : > { %s514_s27 = sshll.u32 %s163_s25, 7  ;;  %s172_s30 = scalar_lea.hbm %s887_s1, %s590_s26 }
   0xe   : > { %s173_s4 = sshll.u32 %s172_s30, 4  ;;  %s167_s5 = scalar_lea.vmem [#allocation3], %s514_s27  ;;  %s174_s4 = int_to_ptr.hbm [resolvable:$true] %s173_s4 }
   0xf   : > { %s175_s6 = sshll.u32 %s167_s5, 4  ;;  %p610_p9 = pnand %p613_p8, %p809_p3  ;;  %s176_s6 = int_to_ptr.vmem [resolvable:$true] %s175_s6 }
  0x10   : > { %p517_p10 = scmp.ge.s32.totalorder %s748_s17, 1  ;;  %p183_p11 = scmp.lt.s32.totalorder %s748_s17, 4 }
  0x11   : > { %s164_s7 = scalar_lea.sflag [#allocation4], %s163_s25  ;;  %s750_s8 = smov 64  }
  0x12   : > { %s751_s9 = smov 4   ;;  %p184_p12 = pnand %p517_p10, %p183_p11 }
  0x13   : > { %612 = dma.hbm_to_vmem [thread:$0]  (!%p610_p9), %s174_s4, 2048, %s176_s6, %s164_s7, %s750_s8, %s750_s8, %s751_s9  }
  0x14   : > { %187 = sbr.rel (%p184_p12) target bundleno = 216 (0xd8), region = 32  ;;  %s189_s10 = sand.u32 (!%p184_p12), 1, %s732_s13  }
  0x15   : > { %s518_s11 = sshll.u32 (!%p184_p12), %s189_s10, 7  ;;  %s190_s12 = scalar_lea.sflag (!%p184_p12), [#allocation4], %s189_s10 }
  0x16   : > { %s834_s18 = scalar_lea.vmem (!%p184_p12), [#allocation3], %s518_s11 }
  0x19   : > { %723 = dma.done.wait (%p816_p7), %s190_s12, 2048  }
  0x1a   : > { %725 = vsyncadd (%p816_p7), %s190_s12, 4294965248  ;;  %s519_s20 = sshll.u32 %s740_s15, 1  ;;  %p521_p0 = scmp.ne.s32.totalorder %s740_s15, 0 }
  0x1b   : > { %p228_p13 = scmp.lt.s32.totalorder %s519_s20, 5 }
  0x1c   : > { %243 = sbr.rel (%p521_p0) target bundleno = 35 (0x23), region = 40 }
  0x1d   : > { %s900_s20 = smov (!%p228_p13, %s519_s20), 5 }
  0x1e   : > { %s520_s21 = sshll.u32 %s900_s20, 1 }
  0x1f   : > { %s233_s26 = scalar_lea.vmem %s886_s0, %s520_s21 }
  0x21   : > { %v752_v0 = vmov 0.0  }
  0x22   : > { %244 = vst [vmem:[#allocation2] sm:$0x3] %v752_v0 }
  0x23 PF: > { %v598_v1 = vld [vmem:[%s834_s18 + $0x38] sm:$0xff]  ;;  %v597_v3 = vld [vmem:[%s834_s18 + $0x30] sm:$0xff]  ;;  %v596_v6 = vld [vmem:[%s834_s18 + $0x28] sm:$0xff]  ;;  %p586_p1 = scmp.ne.s32.totalorder %s740_s15, 2 }
  0x24   : > { %v606_v2 = vld [vmem:[%s834_s18 + $0x78] sm:$0xff]  ;;  %383 = vmatpush.bf16.msra.mxu0 %v598_v1  ;;  %v605_v4 = vld [vmem:[%s834_s18 + $0x70] sm:$0xff]  ;;  %v604_v7 = vld [vmem:[%s834_s18 + $0x68] sm:$0xff] }
  0x25   : > { %396 = vmatpush.bf16.msra.mxu1 %v606_v2  ;;  %v246_v5 = vld [vmem:[%s233_s26] sm:$0xf]  ;;  %v595_v8 = vld [vmem:[%s834_s18 + $0x20] sm:$0xff]  ;;  %v592_v14 = vld [vmem:[%s834_s18 + $0x8] sm:$0xff] }
  0x26   : > { %248 = vst [vmem:[#allocation1] ss:$4 sm:$0xff] %v246_v5  ;;  %v603_v9 = vld [vmem:[%s834_s18 + $0x60] sm:$0xff]  ;;  %v594_v10 = vld [vmem:[%s834_s18 + $0x18] sm:$0xff]  ;;  %v593_v12 = vld [vmem:[%s834_s18 + $0x10] sm:$0xff] }
  0x27   : > { %v602_v11 = vld [vmem:[%s834_s18 + $0x58] sm:$0xff]  ;;  %v601_v13 = vld [vmem:[%s834_s18 + $0x50] sm:$0xff]  ;;  %v600_v15 = vld [vmem:[%s834_s18 + $0x48] sm:$0xff] }
  0x28   : > { %384 = vmatpush.bf16.msra.mxu0 %v597_v3  ;;  %v591_v16 = vld [vmem:[%s834_s18] sm:$0xff] }
  0x29   : > { %397 = vmatpush.bf16.msra.mxu1 %v605_v4  ;;  %v599_v17 = vld [vmem:[%s834_s18 + $0x40] sm:$0xff]  ;;  %v245_v23 = vld [vmem:[#allocation2] sm:$0x3] }
  0x2c   : > { %385 = vmatpush.bf16.msra.mxu0 %v596_v6 }
  0x2d   : > { %398 = vmatpush.bf16.msra.mxu1 %v604_v7  ;;  %v249_v18 = vld.sshfl [vmem:[#allocation1] sm:$0xff pattern:$0x73625140]  ;;  %v250_v19 = vld.sshfl [vmem:[#allocation1 + $0x8] sm:$0xff pattern:$0x73625140] }
  0x2e   : > { %v253_v20 = vpack.c.bf16 %v249_v18, %v249_v18  ;;  %v254_v21 = vpack.c.bf16 %v250_v19, %v250_v19 }
  0x30   : > { %386 = vmatpush.bf16.msra.mxu0 %v595_v8 }
  0x31   : > { %399 = vmatpush.bf16.msra.mxu1 %v603_v9 }
  0x34   : > { %387 = vmatpush.bf16.msra.mxu0 %v594_v10 }
  0x35   : > { %400 = vmatpush.bf16.msra.mxu1 %v602_v11 }
  0x38   : > { %388 = vmatpush.bf16.msra.mxu0 %v593_v12 }
  0x39   : > { %401 = vmatpush.bf16.msra.mxu1 %v601_v13 }
  0x3c   : > { %389 = vmatpush.bf16.msra.mxu0 %v592_v14 }
  0x3d   : > { %402 = vmatpush.bf16.msra.mxu1 %v600_v15 }
  0x40   : > { %390 = vmatpush.bf16.msra.mxu0 %v591_v16 }
  0x41   : > { %403 = vmatpush.bf16.msra.mxu1 %v599_v17 }
  0x43   : > { %391 = vmatmul.bf16.vlgmr.msra.gmra.mxu0 %v253_v20 }
  0x44   : > { %404 = vmatmul.bf16.vlgmr.msra.gmra.mxu1 %v254_v21 }
  0xc0   : > { %v392_v22 = vpop.f32.mrf.mxu0 }
  0xc1   : > { %v405_v24 = vpop.f32.mrf.mxu1 }
  0xc2   : > { %v406_v25 = vadd.f32 %v405_v24, %v392_v22 }
  0xc4   : > { %v409_v26 = vadd.f32 %v406_v25, %v245_v23 }
  0xc5   : > { %414 = sbr.rel (%p586_p1) target bundleno = 216 (0xd8), region = 44 }
  0xc6   : > { %410 = vst [vmem:[#allocation2] sm:$0x3] %v409_v26 }
  0xc8   : > { %v394_v27 = vpop.f32.mrf.mxu0 }
  0xc9   : > { %v407_v28 = vpop.f32.mrf.mxu1 }
  0xca   : > { %v665_v30 = vld [vmem:[%s888_s2] ss:$0 sm:$0xff] }
  0xcd   : > { %v415_v29 = vld [vmem:[#allocation2] sm:$0x3] }
  0xce   : > { %v420_v31 = vadd.f32 %v665_v30, %v415_v29 }
  0xd0   : > { %666 = vtanh.f32 %v420_v31 }
  0xd6   : > { %v667_v32 = vpop.eup %666 }
  0xd7   : > { %422 = vst [vmem:[%s889_s3] sm:$0x3] %v667_v32 }
  0xd8 PF: > { %s16_s17 = sadd.s32 1, %s748_s17   ;;  %s892_s12 = smov %s732_s13 }
  0xd9   : > { %p13_p2 = scmp.ge.s32.totalorder %s16_s17, 5   ;;  %s893_s13 = smov %s736_s14 }
  0xda   : > { %s894_s14 = smov %s822_s24  ;;  %s895_s15 = smov %s744_s16 }
  0xdb   : > { %s896_s16 = smov %s898_s19  ;;  %15 = sbr.rel (!%p13_p2) target bundleno = 4 (0x4), region = 83 }
  0xe0   :  { %442 = vsyncpa [#allocation4], 1 }
  0xe1   :  { %444 = vsyncpa [#allocation4 + $0x1], 1 }

// kernel: _forward_impl.3
= control target key start
LH: loop header
LB: loop body
LE: loop exit
PB: predicated region body
PF: predicated region fallthrough
CT: control target
= control target key end

     0   :  { %vm53_vm0 = vcmask 1041408   ;;  %v454_v3 = vmov 0   ;;  %vm46_vm1 = vcmask 31744   ;;  %s632_s3 = inlined_call_operand.vmem [shape: bf16[4,128], index: 3, kind: input, shape index: {}]   ;;  %s633_s1 = inlined_call_operand.vmem [shape: f32[32,4], index: 1, kind: input, shape index: {}]   ;;  %s634_s2 = inlined_call_operand.vmem [shape: f32[32,1], index: 2, kind: input, shape index: {}]   ;;  %s635_s5 = inlined_call_operand.vmem [shape: bf16[128,128], index: 5, kind: input, shape index: {}]   ;;  %s636_s4 = inlined_call_operand.vmem [shape: f32[1,128], index: 4, kind: input, shape index: {}, may-alias: {4,6,8}]   ;;  %s637_s6 = inlined_call_operand.vmem [shape: f32[1,128], index: 6, kind: input, shape index: {}, may-alias: {4,6,8}]   ;;  %s638_s0 = inlined_call_operand.vmem [shape: f32[32,128], index: 0, kind: input, shape index: {}]   ;;  %s639_s8 = inlined_call_operand.vmem [shape: f32[1,128], index: 8, kind: input, shape index: {}, may-alias: {4,6,8}]   ;;  %s640_s7 = inlined_call_operand.vmem [shape: bf16[128,128], index: 7, kind: input, shape index: {}]   ;;  %s641_s9 = inlined_call_operand.vmem [shape: f32[32,128], index: 9, kind: output, shape index: {0}]   ;;  %s642_s10 = inlined_call_operand.vmem [shape: f32[32,128], index: 10, kind: output, shape index: {1}]  }
   0x1   :  { %v41_v0 = vld [vmem:[%s632_s3] sm:$0x3]  ;;  %v36_v2 = vld [vmem:[%s633_s1 + $0x8] sm:$0xff]  ;;  %442 = vset.pattern.permute.xlu1 %v454_v3  ;;  %441 = vset.pattern.permute.xlu0 %v454_v3  ;;  %v86_v7 = vld [vmem:[%s634_s2 + $0x10] sm:$0xff] }
   0x2   :  { %v35_v1 = vld [vmem:[%s633_s1] sm:$0xff]  ;;  %v55_v4 = vsel %vm53_vm0, %v41_v0, 0  ;;  %100 = vperm.xlu0 %441, %v86_v7   ;;  %v415_v8 = vld [vmem:[%s635_s5 + $0x38] sm:$0xff]  ;;  %v414_v9 = vld [vmem:[%s635_s5 + $0x30] sm:$0xff] }
   0x3   :  { %v39_v5 = vpack.c.bf16 %v36_v2, %v35_v1  ;;  %v84_v6 = vld [vmem:[%s634_s2] sm:$0xff]  ;;  %64 = vmatpush.bf16.msra.mxu0 %v55_v4  ;;  %182 = vmatpush.bf16.msra.mxu1 %v415_v8  ;;  %v85_v10 = vld [vmem:[%s634_s2 + $0x8] sm:$0xff]  ;;  %v87_v11 = vld [vmem:[%s634_s2 + $0x18] sm:$0xff] }
   0x4   :  { %90 = vperm.xlu1 %442, %v84_v6   ;;  %424 = vmatpush.bf16.msra.mxu3 %v415_v8  ;;  %v413_v12 = vld [vmem:[%s635_s5 + $0x28] sm:$0xff]  ;;  %v412_v13 = vld [vmem:[%s635_s5 + $0x20] sm:$0xff]  ;;  %v37_v14 = vld [vmem:[%s633_s1 + $0x10] sm:$0xff] }
   0x5   :  { %v38_v15 = vld [vmem:[%s633_s1 + $0x18] sm:$0xff]  ;;  %v410_v18 = vld [vmem:[%s635_s5 + $0x10] sm:$0xff]  ;;  %v409_v19 = vld [vmem:[%s635_s5 + $0x8] sm:$0xff] }
   0x6   :  { %342 = vmatmul.msk.bf16.vlgmr.msra.gmra.mxu0 %vm46_vm1, %v39_v5  ;;  %v40_v16 = vpack.c.bf16 %v38_v15, %v37_v14  ;;  %v411_v17 = vld [vmem:[%s635_s5 + $0x18] sm:$0xff]  ;;  %v408_v20 = vld [vmem:[%s635_s5] sm:$0xff]  ;;  %v77_v27 = vld [vmem:[%s638_s0 + $0x8] sm:$0xff] }
   0x7   :  { %183 = vmatpush.bf16.msra.mxu1 %v414_v9  ;;  %v443_v23 = vld [vmem:[%s636_s4] ss:$0 sm:$0xff]  ;;  %v78_v38 = vld [vmem:[%s638_s0 + $0x10] sm:$0xff]  ;;  %v79_v40 = vld [vmem:[%s638_s0 + $0x18] sm:$0xff] }
   0x8   :  { %425 = vmatpush.bf16.msra.mxu3 %v414_v9  ;;  %v76_v25 = vld [vmem:[%s638_s0] sm:$0xff]  ;;  %v423_v48 = vld [vmem:[%s640_s7 + $0x38] sm:$0xff]  ;;  %v422_v49 = vld [vmem:[%s640_s7 + $0x30] sm:$0xff] }
   0x9   :  { %311 = vmatpush.bf16.msrb.mxu0 %v423_v48  ;;  %432 = vmatpush.bf16.msra.mxu2 %v423_v48  ;;  %v421_v50 = vld [vmem:[%s640_s7 + $0x28] sm:$0xff]  ;;  %v420_v51 = vld [vmem:[%s640_s7 + $0x20] sm:$0xff]  ;;  %v419_v52 = vld [vmem:[%s640_s7 + $0x18] sm:$0xff] }
   0xa   :  { %105 = vperm.xlu0 %441, %v87_v11   ;;  %v418_v53 = vld [vmem:[%s640_s7 + $0x10] sm:$0xff]  ;;  %v417_v54 = vld [vmem:[%s640_s7 + $0x8] sm:$0xff]  ;;  %v444_v55 = vld [vmem:[%s637_s6] ss:$0 sm:$0xff] }
   0xb   :  { %184 = vmatpush.bf16.msra.mxu1 %v413_v12  ;;  %v416_v56 = vld [vmem:[%s640_s7] sm:$0xff] }
   0xc   :  { %95 = vperm.xlu1 %442, %v85_v10   ;;  %426 = vmatpush.bf16.msra.mxu3 %v413_v12 }
   0xd   :  { %312 = vmatpush.bf16.msrb.mxu0 %v422_v49  ;;  %433 = vmatpush.bf16.msra.mxu2 %v422_v49 }
   0xf   :  { %185 = vmatpush.bf16.msra.mxu1 %v412_v13 }
  0x10   :  { %427 = vmatpush.bf16.msra.mxu3 %v412_v13 }
  0x11   :  { %313 = vmatpush.bf16.msrb.mxu0 %v421_v50  ;;  %434 = vmatpush.bf16.msra.mxu2 %v421_v50 }
  0x13   :  { %186 = vmatpush.bf16.msra.mxu1 %v411_v17 }
  0x14   :  { %428 = vmatpush.bf16.msra.mxu3 %v411_v17 }
  0x15   :  { %314 = vmatpush.bf16.msrb.mxu0 %v420_v51  ;;  %435 = vmatpush.bf16.msra.mxu2 %v420_v51 }
  0x16   :  { %343 = vmatmul.msk.bf16.gmra.mxu0 %vm46_vm1, %v40_v16 }
  0x17   :  { %187 = vmatpush.bf16.msra.mxu1 %v410_v18 }
  0x18   :  { %429 = vmatpush.bf16.msra.mxu3 %v410_v18 }
  0x19   :  { %315 = vmatpush.bf16.msrb.mxu0 %v419_v52  ;;  %436 = vmatpush.bf16.msra.mxu2 %v419_v52 }
  0x1b   :  { %188 = vmatpush.bf16.msra.mxu1 %v409_v19 }
  0x1c   :  { %430 = vmatpush.bf16.msra.mxu3 %v409_v19 }
  0x1d   :  { %316 = vmatpush.bf16.msrb.mxu0 %v418_v53  ;;  %437 = vmatpush.bf16.msra.mxu2 %v418_v53 }
  0x1f   :  { %189 = vmatpush.bf16.msra.mxu1 %v408_v20 }
  0x20   :  { %431 = vmatpush.bf16.msra.mxu3 %v408_v20 }
  0x21   :  { %317 = vmatpush.bf16.msrb.mxu0 %v417_v54  ;;  %438 = vmatpush.bf16.msra.mxu2 %v417_v54 }
  0x25   :  { %318 = vmatpush.bf16.msrb.mxu0 %v416_v56  ;;  %439 = vmatpush.bf16.msra.mxu2 %v416_v56 }
  0x74   :  { %v101_v36 = vpop.permute.xlu0 %100 }
  0x76   :  { %v91_v22 = vpop.permute.xlu1 %90 }
  0x7c   :  { %v106_v44 = vpop.permute.xlu0 %105 }
  0x7e   :  { %v96_v30 = vpop.permute.xlu1 %95 }
  0x83   :  { %v66_v21 = vpop.f32.mrf.mxu0 }
  0x84   :  { %v67_v24 = vadd.f32 %v443_v23, %v66_v21 }
  0x86   :  { %v80_v28 = vadd.f32 %v76_v25, %v67_v24 }
  0x88   :  { %v108_v32 = vmul.f32 %v91_v22, %v80_v28 }
  0x8b   :  { %v68_v26 = vpop.f32.mrf.mxu0 }
  0x8c   :  { %v69_v29 = vadd.f32 %v443_v23, %v68_v26 }
  0x8e   :  { %v81_v31 = vadd.f32 %v77_v27, %v69_v29 }
  0x90   :  { %v109_v33 = vmul.f32 %v96_v30, %v81_v31 }
  0x92   :  { %v112_v34 = vpack.c.bf16 %v109_v33, %v108_v32 }
  0x93   :  { %v71_v35 = vpop.f32.mrf.mxu0 }
  0x94   :  { %190 = vmatmul.bf16.vlgmr.msra.gmra.mxu1 %v112_v34  ;;  %v72_v37 = vadd.f32 %v443_v23, %v71_v35 }
  0x96   :  { %v82_v41 = vadd.f32 %v78_v38, %v72_v37 }
  0x98   :  { %v110_v45 = vmul.f32 %v101_v36, %v82_v41 }
  0x9b   :  { %v73_v39 = vpop.f32.mrf.mxu0 }
  0x9c   :  { %v74_v42 = vadd.f32 %v443_v23, %v73_v39  ;;  %v445_v39 = vld [vmem:[%s639_s8] ss:$0 sm:$0xff] }
  0x9e   :  { %v83_v43 = vadd.f32 %v79_v40, %v74_v42 }
  0xa0   :  { %v111_v46 = vmul.f32 %v106_v44, %v83_v43 }
  0xa2   :  { %v113_v47 = vpack.c.bf16 %v111_v46, %v110_v45 }
  0xa4   :  { %195 = vmatmul.bf16.vlgmr.msra.gmra.mxu3 %v113_v47 }
 0x111   :  { %v191_v57 = vpop.f32.mrf.mxu1 }
 0x112   :  { %v192_v58 = vadd.f32 %v444_v55, %v191_v57 }
 0x114   :  { %v201_v59 = vmul.f32 %v192_v58, %v192_v58 }
 0x116   :  { %v205_v60 = vmul.f32 %v201_v59, %v192_v58 }
 0x118   :  { %v209_v61 = vmul.f32 0.044715, %v205_v60 }
 0x119   :  { %v193_v62 = vpop.f32.mrf.mxu1 }
 0x11a   :  { %v213_v63 = vadd.f32 %v209_v61, %v192_v58  ;;  %v194_v0 = vadd.f32 %v444_v55, %v193_v62 }
 0x11c   :  { %v217_v1 = vmul.f32 0.7978846, %v213_v63  ;;  %v202_v2 = vmul.f32 %v194_v0, %v194_v0 }
 0x11e   :  { %446 = vtanh.f32 %v217_v1  ;;  %v206_v3 = vmul.f32 %v202_v2, %v194_v0 }
 0x120   :  { %v210_v4 = vmul.f32 0.044715, %v206_v3 }
 0x122   :  { %v214_v5 = vadd.f32 %v210_v4, %v194_v0 }
 0x124   :  { %v447_v6 = vpop.eup %446  ;;  %v218_v7 = vmul.f32 0.7978846, %v214_v5 }
 0x125   :  { %v225_v8 = vadd.f32 1.0, %v447_v6 }
 0x126   :  { %448 = vtanh.f32 %v218_v7 }
 0x127   :  { %v196_v9 = vpop.f32.mrf.mxu3  ;;  %v229_v10 = vmul.f32 0.5, %v225_v8 }
 0x128   :  { %v197_v11 = vadd.f32 %v444_v55, %v196_v9 }
 0x129   :  { %v233_v12 = vmul.f32 %v229_v10, %v192_v58 }
 0x12a   :  { %v203_v13 = vmul.f32 %v197_v11, %v197_v11 }
 0x12b   :  { %237 = vst [vmem:[%s641_s9] sm:$0xff] %v233_v12 }
 0x12c   :  { %v449_v14 = vpop.eup %448  ;;  %v207_v15 = vmul.f32 %v203_v13, %v197_v11 }
 0x12d   :  { %v226_v16 = vadd.f32 1.0, %v449_v14 }
 0x12e   :  { %v211_v17 = vmul.f32 0.044715, %v207_v15 }
 0x12f   :  { %v198_v18 = vpop.f32.mrf.mxu3  ;;  %v230_v19 = vmul.f32 0.5, %v226_v16 }
 0x130   :  { %v215_v20 = vadd.f32 %v211_v17, %v197_v11  ;;  %v199_v21 = vadd.f32 %v444_v55, %v198_v18 }
 0x131   :  { %v234_v22 = vmul.f32 %v230_v19, %v194_v0 }
 0x132   :  { %v204_v23 = vmul.f32 %v199_v21, %v199_v21  ;;  %v219_v24 = vmul.f32 0.7978846, %v215_v20 }
 0x133   :  { %238 = vst [vmem:[%s641_s9 + $0x8] sm:$0xff] %v234_v22  ;;  %v241_v25 = vpack.c.bf16 %v234_v22, %v233_v12 }
 0x134   :  { %v208_v26 = vmul.f32 %v204_v23, %v199_v21  ;;  %450 = vtanh.f32 %v219_v24 }
 0x135   :  { %319 = vmatmul.bf16.vlgmr.msrb.gmra.mxu0 %v241_v25 }
 0x136   :  { %v212_v27 = vmul.f32 0.044715, %v208_v26 }
 0x138   :  { %v216_v28 = vadd.f32 %v212_v27, %v199_v21 }
 0x13a   :  { %v451_v29 = vpop.eup %450  ;;  %v220_v30 = vmul.f32 0.7978846, %v216_v28 }
 0x13b   :  { %v227_v31 = vadd.f32 1.0, %v451_v29 }
 0x13c   :  { %452 = vtanh.f32 %v220_v30 }
 0x13d   :  { %v231_v32 = vmul.f32 0.5, %v227_v31 }
 0x13f   :  { %v235_v33 = vmul.f32 %v231_v32, %v197_v11 }
 0x141   :  { %239 = vst [vmem:[%s641_s9 + $0x10] sm:$0xff] %v235_v33 }
 0x142   :  { %v453_v34 = vpop.eup %452 }
 0x143   :  { %v228_v35 = vadd.f32 1.0, %v453_v34 }
 0x145   :  { %v232_v36 = vmul.f32 0.5, %v228_v35 }
 0x147   :  { %v236_v37 = vmul.f32 %v232_v36, %v199_v21 }
 0x149   :  { %240 = vst [vmem:[%s641_s9 + $0x18] sm:$0xff] %v236_v37  ;;  %v242_v38 = vpack.c.bf16 %v236_v37, %v235_v33 }
 0x14b   :  { %324 = vmatmul.bf16.vlgmr.msra.gmra.mxu2 %v242_v38 }
 0x1b2   :  { %v320_v40 = vpop.f32.mrf.mxu0 }
 0x1b3   :  { %v321_v41 = vadd.f32 %v445_v39, %v320_v40 }
 0x1b5   :  { %330 = vst [vmem:[%s642_s10] sm:$0xff] %v321_v41 }
 0x1ba   :  { %v322_v42 = vpop.f32.mrf.mxu0 }
 0x1bb   :  { %v323_v43 = vadd.f32 %v445_v39, %v322_v42 }
 0x1bd   :  { %331 = vst [vmem:[%s642_s10 + $0x8] sm:$0xff] %v323_v43 }
 0x1ce   :  { %v325_v44 = vpop.f32.mrf.mxu2 }
 0x1cf   :  { %v326_v45 = vadd.f32 %v445_v39, %v325_v44 }
 0x1d1   :  { %332 = vst [vmem:[%s642_s10 + $0x10] sm:$0xff] %v326_v45 }
 0x1d6   :  { %v327_v46 = vpop.f32.mrf.mxu2 }
 0x1d7   :  { %v328_v47 = vadd.f32 %v445_v39, %v327_v46 }
 0x1d9   :  { %333 = vst [vmem:[%s642_s10 + $0x18] sm:$0xff] %v328_v47 }

// kernel: _forward_impl.5
= control target key start
LH: loop header
LB: loop body
LE: loop exit
PB: predicated region body
PF: predicated region fallthrough
CT: control target
= control target key end

     0   :  { %s2716_s18 = smov 0   ;;  %s3333_s0 = inlined_call_operand.vmem [shape: f32[2,128,128], index: 0, kind: input, shape index: {}]   ;;  %s3334_s1 = inlined_call_operand.vmem [shape: f32[2,128,128], index: 1, kind: input, shape index: {}]   ;;  %s3335_s2 = inlined_call_operand.vmem [shape: f32[2,128,1], index: 2, kind: input, shape index: {}]   ;;  %s3336_s3 = inlined_call_operand.vmem [shape: f32[2,1,128], index: 3, kind: input, shape index: {}]   ;;  %s3337_s4 = inlined_call_operand.vmem [shape: bf16[128,128], index: 4, kind: input, shape index: {}]   ;;  %s3338_s5 = inlined_call_operand.vmem [shape: f32[1,128], index: 5, kind: input, shape index: {}, may-alias: {5,7,9,11,13}]   ;;  %s3339_s6 = inlined_call_operand.vmem [shape: bf16[128,128], index: 6, kind: input, shape index: {}]   ;;  %s3340_s7 = inlined_call_operand.vmem [shape: f32[1,128], index: 7, kind: input, shape index: {}, may-alias: {5,7,9,11,13}]   ;;  %s3341_s8 = inlined_call_operand.vmem [shape: bf16[128,128], index: 8, kind: input, shape index: {}]   ;;  %s3342_s9 = inlined_call_operand.vmem [shape: f32[1,128], index: 9, kind: input, shape index: {}, may-alias: {5,7,9,11,13}]   ;;  %s3343_s10 = inlined_call_operand.vmem [shape: bf16[128,128], index: 10, kind: input, shape index: {}]   ;;  %s3344_s11 = inlined_call_operand.vmem [shape: f32[1,128], index: 11, kind: input, shape index: {}, may-alias: {5,7,9,11,13}]   ;;  %s3345_s12 = inlined_call_operand.vmem [shape: bf16[128,128], index: 12, kind: input, shape index: {}]   ;;  %s3346_s13 = inlined_call_operand.vmem [shape: f32[1,128], index: 13, kind: input, shape index: {}, may-alias: {5,7,9,11,13}]   ;;  %s3347_s14 = inlined_call_operand.vmem [shape: f32[2,128,128], index: 14, kind: output, shape index: {0}]   ;;  %s3348_s15 = inlined_call_operand.vmem [shape: f32[2,128,128], index: 15, kind: output, shape index: {1}]  }
   0x1 LB: > { %s2139_s19 = sadd.s32 4294967295, %s2633_s18   ;;  %p2143_p0 = scmp.ge.s32.totalorder %s2633_s18, 1  ;;  %s2633_s18 = sphi %s2716_s18, %s26_s18  }
   0x2   : > { %p468_p1 = scmp.lt.s32.totalorder %s2633_s18, 3 }
   0x4   : > { %p469_p2 = pnand %p2143_p0, %p468_p1 }
   0x5   : > { %p534_p3 = scmp.lt.s32.totalorder (!%p469_p2), %s2139_s19, 1 }
   0x6   : > { %472 = sbr.rel (%p469_p2) target bundleno = 1492 (0x5d4), region = 76 }
   0xb   : > { %v2635_v0 = vmov 0   ;;  %s3364_s19 = smov (!%p534_p3, %s2139_s19), 1  ;;  %v2344_v7 = vld [vmem:[%s3337_s4 + $0x38] sm:$0xff]  ;;  %v2343_v9 = vld [vmem:[%s3337_s4 + $0x30] sm:$0xff]  ;;  %v2342_v13 = vld [vmem:[%s3337_s4 + $0x28] sm:$0xff] }
   0xc   : > { %2395 = vset.pattern.permute.xlu1 %v2635_v0  ;;  %2394 = vset.pattern.permute.xlu0 %v2635_v0  ;;  %s2727_s20 = sshll.u32 %s3364_s19, 7  ;;  %s551_s23 = scalar_lea.vmem %s3336_s3, %s3364_s19  ;;  %v2352_v8 = vld [vmem:[%s3339_s6 + $0x38] sm:$0xff]  ;;  %v2351_v10 = vld [vmem:[%s3339_s6 + $0x30] sm:$0xff]  ;;  %v2350_v15 = vld [vmem:[%s3339_s6 + $0x28] sm:$0xff] }
   0xd   : > { %2396 = vset.pattern.permute.xlu2 %v2635_v0  ;;  %s2737_s26 = scalar_lea.vmem %s3335_s2, %s2727_s20  ;;  %799 = vmatpush.bf16.msra.mxu0 %v2344_v7  ;;  %v2341_v16 = vld [vmem:[%s3337_s4 + $0x20] sm:$0xff]  ;;  %v2340_v20 = vld [vmem:[%s3337_s4 + $0x18] sm:$0xff]  ;;  %v2339_v27 = vld [vmem:[%s3337_s4 + $0x10] sm:$0xff]  ;;  %s2826_s30 = scalar_lea.vmem %s3333_s0, %s2727_s20 }
   0xe   : > { %v564_v1 = vld [vmem:[%s2737_s26 + $0x10] sm:$0xff]  ;;  %v562_v2 = vld [vmem:[%s2737_s26] sm:$0xff]  ;;  %v565_v4 = vld [vmem:[%s2737_s26 + $0x18] sm:$0xff]  ;;  %932 = vmatpush.bf16.msra.mxu1 %v2352_v8  ;;  %s2845_s21 = scalar_lea.vmem %s3334_s1, %s2727_s20  ;;  %s3031_s29 = scalar_lea.vmem %s3347_s14, %s2727_s20 }
   0xf   : > { %623 = vperm.xlu1 %2395, %v564_v1   ;;  %613 = vperm.xlu0 %2394, %v562_v2   ;;  %v566_v3 = vld [vmem:[%s2737_s26 + $0x20] sm:$0xff]  ;;  %v563_v5 = vld [vmem:[%s2737_s26 + $0x8] sm:$0xff]  ;;  %v569_v11 = vld [vmem:[%s2737_s26 + $0x38] sm:$0xff]  ;;  %s3312_s17 = scalar_lea.vmem %s3348_s15, %s2727_s20 }
  0x10   : > { %633 = vperm.xlu2 %2396, %v566_v3   ;;  %v567_v6 = vld [vmem:[%s2737_s26 + $0x28] sm:$0xff]  ;;  %v568_v12 = vld [vmem:[%s2737_s26 + $0x30] sm:$0xff]  ;;  %v570_v14 = vld [vmem:[%s2737_s26 + $0x40] sm:$0xff] }
  0x11   : > { %800 = vmatpush.bf16.msra.mxu0 %v2343_v9  ;;  %v2349_v17 = vld [vmem:[%s3339_s6 + $0x20] sm:$0xff]  ;;  %v572_v18 = vld [vmem:[%s2737_s26 + $0x50] sm:$0xff]  ;;  %v571_v19 = vld [vmem:[%s2737_s26 + $0x48] sm:$0xff] }
  0x12   : > { %933 = vmatpush.bf16.msra.mxu1 %v2351_v10  ;;  %v573_v21 = vld [vmem:[%s2737_s26 + $0x58] sm:$0xff]  ;;  %v575_v23 = vld [vmem:[%s2737_s26 + $0x68] sm:$0xff]  ;;  %v574_v24 = vld [vmem:[%s2737_s26 + $0x60] sm:$0xff] }
  0x13   : > { %v2348_v22 = vld [vmem:[%s3339_s6 + $0x18] sm:$0xff]  ;;  %v576_v25 = vld [vmem:[%s2737_s26 + $0x70] sm:$0xff]  ;;  %v2338_v29 = vld [vmem:[%s3337_s4 + $0x8] sm:$0xff] }
  0x14   : > { %v577_v26 = vld [vmem:[%s2737_s26 + $0x78] sm:$0xff]  ;;  %v2347_v28 = vld [vmem:[%s3339_s6 + $0x10] sm:$0xff]  ;;  %v2346_v30 = vld [vmem:[%s3339_s6 + $0x8] sm:$0xff] }
  0x15   : > { %801 = vmatpush.bf16.msra.mxu0 %v2342_v13  ;;  %v2802_v31 = vld [vmem:[%s551_s23] ss:$0 sm:$0xff]  ;;  %v596_v47 = vld [vmem:[%s2826_s30 + $0x8] sm:$0xff]  ;;  %v597_v1 = vld [vmem:[%s2826_s30 + $0x10] sm:$0xff] }
  0x16   : > { %934 = vmatpush.bf16.msra.mxu1 %v2350_v15  ;;  %v2337_v33 = vld [vmem:[%s3337_s4] sm:$0xff]  ;;  %v580_v52 = vld [vmem:[%s2845_s21 + $0x8] sm:$0xff]  ;;  %v598_v2 = vld [vmem:[%s2826_s30 + $0x18] sm:$0xff] }
  0x17   : > { %628 = vperm.xlu1 %2395, %v565_v4   ;;  %618 = vperm.xlu0 %2394, %v563_v5   ;;  %v2345_v34 = vld [vmem:[%s3339_s6] sm:$0xff]  ;;  %v581_v5 = vld [vmem:[%s2845_s21 + $0x10] sm:$0xff] }
  0x18   : > { %638 = vperm.xlu2 %2396, %v567_v6   ;;  %v595_v46 = vld [vmem:[%s2826_s30] sm:$0xff]  ;;  %v582_v6 = vld [vmem:[%s2845_s21 + $0x18] sm:$0xff] }
  0x19   : > { %802 = vmatpush.bf16.msra.mxu0 %v2341_v16  ;;  %v579_v49 = vld [vmem:[%s2845_s21] sm:$0xff] }
  0x1a   : > { %935 = vmatpush.bf16.msra.mxu1 %v2349_v17 }
  0x1d   : > { %803 = vmatpush.bf16.msra.mxu0 %v2340_v20  ;;  %v609_v20 = vld [vmem:[%s2826_s30 + $0x70] sm:$0xff] }
  0x1e   : > { %936 = vmatpush.bf16.msra.mxu1 %v2348_v22 }
  0x1f   : > { %648 = vperm.xlu1 %2395, %v569_v11   ;;  %643 = vperm.xlu0 %2394, %v568_v12  }
  0x20   : > { %653 = vperm.xlu2 %2396, %v570_v14  }
  0x21   : > { %804 = vmatpush.bf16.msra.mxu0 %v2339_v27  ;;  %v608_v27 = vld [vmem:[%s2826_s30 + $0x68] sm:$0xff] }
  0x22   : > { %937 = vmatpush.bf16.msra.mxu1 %v2347_v28  ;;  %v607_v28 = vld [vmem:[%s2826_s30 + $0x60] sm:$0xff] }
  0x25   : > { %805 = vmatpush.bf16.msra.mxu0 %v2338_v29  ;;  %v593_v29 = vld [vmem:[%s2845_s21 + $0x70] sm:$0xff] }
  0x26   : > { %938 = vmatpush.bf16.msra.mxu1 %v2346_v30 }
  0x27   : > { %663 = vperm.xlu1 %2395, %v572_v18   ;;  %658 = vperm.xlu0 %2394, %v571_v19   ;;  %v599_v18 = vld [vmem:[%s2826_s30 + $0x20] sm:$0xff]  ;;  %v600_v19 = vld [vmem:[%s2826_s30 + $0x28] sm:$0xff] }
  0x28   : > { %668 = vperm.xlu2 %2396, %v573_v21  }
  0x29   : > { %806 = vmatpush.bf16.msra.mxu0 %v2337_v33  ;;  %v594_v33 = vld [vmem:[%s2845_s21 + $0x78] sm:$0xff] }
  0x2a   : > { %939 = vmatpush.bf16.msra.mxu1 %v2345_v34 }
  0x2f   : > { %678 = vperm.xlu1 %2395, %v575_v23   ;;  %673 = vperm.xlu0 %2394, %v574_v24   ;;  %v583_v23 = vld [vmem:[%s2845_s21 + $0x20] sm:$0xff]  ;;  %v584_v24 = vld [vmem:[%s2845_s21 + $0x28] sm:$0xff] }
  0x30   : > { %683 = vperm.xlu2 %2396, %v576_v25   ;;  %v610_v25 = vld [vmem:[%s2826_s30 + $0x78] sm:$0xff] }
  0x37   : > { %688 = vperm.xlu0 %2394, %v577_v26  }
  0x6a   : > { %v634_v32 = vpop.permute.xlu2 %633 }
  0x6b   : > { %v2811_v35 = vmul.f32 %v2802_v31, %v634_v32  ;;  %v695_v21 = vmul.f32 %v634_v32, %v599_v18  ;;  %v602_v18 = vld [vmem:[%s2826_s30 + $0x38] sm:$0xff] }
  0x6d   : > { %v2917_v34 = vadd.f32 %v695_v21, %v583_v23  ;;  %v588_v23 = vld [vmem:[%s2845_s21 + $0x48] sm:$0xff] }
  0x72   : > { %v639_v36 = vpop.permute.xlu2 %638 }
  0x73   : > { %v2814_v37 = vmul.f32 %v2802_v31, %v639_v36  ;;  %v696_v22 = vmul.f32 %v639_v36, %v600_v19  ;;  %v606_v36 = vld [vmem:[%s2826_s30 + $0x58] sm:$0xff]  ;;  %v601_v19 = vld [vmem:[%s2826_s30 + $0x30] sm:$0xff] }
  0x7a   : > { %v2816_v38 = vpop.permute.xlu2 %653 }
  0x7b   : > { %v2820_v39 = vmul.f32 %v2802_v31, %v2816_v38 }
  0x81   : > { %v624_v40 = vpop.permute.xlu1 %623  ;;  %v614_v41 = vpop.permute.xlu0 %613 }
  0x82   : > { %v2829_v42 = vmul.f32 %v2802_v31, %v624_v40  ;;  %v2832_v43 = vmul.f32 %v2802_v31, %v614_v41  ;;  %v2834_v44 = vpop.permute.xlu2 %668  ;;  %v691_v48 = vmul.f32 %v614_v41, %v595_v46  ;;  %v693_v3 = vmul.f32 %v624_v40, %v597_v1 }
  0x83   : > { %v2838_v45 = vmul.f32 %v2802_v31, %v2834_v44  ;;  %v2919_v40 = vadd.f32 %v696_v22, %v584_v24  ;;  %v702_v1 = vmul.f32 %v2834_v44, %v606_v36  ;;  %v587_v22 = vld [vmem:[%s2845_s21 + $0x40] sm:$0xff] }
  0x84   : > { %v2856_v57 = vadd.f32 %v691_v48, %v579_v49  ;;  %v2885_v9 = vadd.f32 %v693_v3, %v581_v5  ;;  %v605_v48 = vld [vmem:[%s2826_s30 + $0x50] sm:$0xff]  ;;  %v590_v5 = vld [vmem:[%s2845_s21 + $0x58] sm:$0xff] }
  0x85   : > { %v2948_v44 = vadd.f32 %v702_v1, %v590_v5 }
  0x89   : > { %v629_v50 = vpop.permute.xlu1 %628  ;;  %v619_v51 = vpop.permute.xlu0 %618 }
  0x8a   : > { %v2851_v53 = vmul.f32 %v2802_v31, %v629_v50  ;;  %v692_v54 = vmul.f32 %v619_v51, %v596_v47  ;;  %v2854_v55 = vmul.f32 %v2802_v31, %v619_v51  ;;  %v684_v56 = vpop.permute.xlu2 %683  ;;  %v694_v4 = vmul.f32 %v629_v50, %v598_v2  ;;  %v592_v50 = vld [vmem:[%s2845_s21 + $0x68] sm:$0xff]  ;;  %v591_v51 = vld [vmem:[%s2845_s21 + $0x60] sm:$0xff] }
  0x8b   : > { %v2861_v59 = vmul.f32 %v2802_v31, %v684_v56  ;;  %v705_v26 = vmul.f32 %v684_v56, %v609_v20  ;;  %v603_v56 = vld [vmem:[%s2826_s30 + $0x40] sm:$0xff] }
  0x8c   : > { %v2858_v58 = vadd.f32 %v692_v54, %v580_v52  ;;  %v2887_v10 = vadd.f32 %v694_v4, %v582_v6  ;;  %v725_v54 = vpack.c.bf16 %v2919_v40, %v2917_v34  ;;  %v589_v6 = vld [vmem:[%s2845_s21 + $0x50] sm:$0xff] }
  0x8d   : > { %v2926_v49 = vadd.f32 %v705_v26, %v593_v29 }
  0x8e   : > { %v2865_v60 = vpack.c.bf16 %v2858_v58, %v2856_v57  ;;  %v2897_v13 = vpack.c.bf16 %v2887_v10, %v2885_v9 }
  0x90   : > { %807 = vmatmul.bf16.vlgmr.msra.gmra.mxu0 %v2865_v60  ;;  %940 = vmatmul.bf16.vlgmr.msra.gmra.mxu1 %v2865_v60 }
  0x91   : > { %v2869_v61 = vpop.permute.xlu1 %648  ;;  %v2871_v62 = vpop.permute.xlu0 %643 }
  0x92   : > { %v2875_v63 = vmul.f32 %v2802_v31, %v2869_v61  ;;  %v2879_v0 = vmul.f32 %v2802_v31, %v2871_v62  ;;  %v698_v24 = vmul.f32 %v2869_v61, %v602_v18 }
  0x99   : > { %v664_v7 = vpop.permute.xlu1 %663  ;;  %v659_v8 = vpop.permute.xlu0 %658 }
  0x9a   : > { %v2890_v11 = vmul.f32 %v2802_v31, %v664_v7  ;;  %v2893_v12 = vmul.f32 %v2802_v31, %v659_v8  ;;  %v701_v2 = vmul.f32 %v664_v7, %v605_v48 }
  0x9c   : > { %v2950_v7 = vadd.f32 %v701_v2, %v589_v6 }
  0x9e   : > { %v728_v29 = vpack.c.bf16 %v2948_v44, %v2950_v7 }
  0xa0   : > { %812 = vmatmul.bf16.gmra.mxu0 %v2897_v13  ;;  %945 = vmatmul.bf16.gmra.mxu1 %v2897_v13 }
  0xa1   : > { %v679_v14 = vpop.permute.xlu1 %678  ;;  %v674_v15 = vpop.permute.xlu0 %673 }
  0xa2   : > { %v2902_v16 = vmul.f32 %v2802_v31, %v679_v14  ;;  %v2905_v17 = vmul.f32 %v2802_v31, %v674_v15  ;;  %v704_v46 = vmul.f32 %v679_v14, %v608_v27  ;;  %v703_v47 = vmul.f32 %v674_v15, %v607_v28  ;;  %v604_v14 = vld [vmem:[%s2826_s30 + $0x48] sm:$0xff]  ;;  %v585_v27 = vld [vmem:[%s2845_s21 + $0x30] sm:$0xff] }
  0xa3   : > { %v699_v15 = vmul.f32 %v2816_v38, %v603_v56  ;;  %v700_v20 = vmul.f32 %v659_v8, %v604_v14  ;;  %v586_v38 = vld [vmem:[%s2845_s21 + $0x38] sm:$0xff] }
  0xa4   : > { %v2938_v3 = vadd.f32 %v704_v46, %v592_v50  ;;  %v2940_v4 = vadd.f32 %v703_v47, %v591_v51  ;;  %v2966_v8 = vadd.f32 %v698_v24, %v586_v38  ;;  %v2985_v51 = vld [vmem:[%s3340_s7] ss:$0 sm:$0xff] }
  0xa5   : > { %v2958_v26 = vadd.f32 %v699_v15, %v587_v22  ;;  %v2962_v28 = vadd.f32 %v700_v20, %v588_v23 }
  0xa6   : > { %v729_v21 = vpack.c.bf16 %v2938_v3, %v2940_v4 }
  0xa9   : > { %v689_v30 = vpop.permute.xlu0 %688 }
  0xaa   : > { %v706_v41 = vmul.f32 %v689_v30, %v610_v25  ;;  %v2922_v32 = vmul.f32 %v2802_v31, %v689_v30  ;;  %v697_v25 = vmul.f32 %v2871_v62, %v601_v19 }
  0xac   : > { %v2930_v52 = vadd.f32 %v706_v41, %v594_v33  ;;  %v2968_v30 = vadd.f32 %v697_v25, %v585_v27  ;;  %v727_v33 = vpack.c.bf16 %v2962_v28, %v2958_v26 }
  0xae   : > { %v730_v31 = vpack.c.bf16 %v2930_v52, %v2926_v49  ;;  %v726_v61 = vpack.c.bf16 %v2966_v8, %v2968_v30 }
  0xb0   : > { %817 = vmatmul.bf16.gmra.mxu0 %v725_v54  ;;  %950 = vmatmul.bf16.gmra.mxu1 %v725_v54 }
  0xb1   : > { %1441 = vmatpush.bf16.msra.mxu3 %v730_v31 }
  0xb5   : > { %1442 = vmatpush.bf16.msra.mxu3 %v729_v21 }
  0xb9   : > { %1443 = vmatpush.bf16.msra.mxu3 %v728_v29 }
  0xbd   : > { %1444 = vmatpush.bf16.msra.mxu3 %v727_v33 }
  0xc0   : > { %822 = vmatmul.bf16.gmra.mxu0 %v726_v61  ;;  %955 = vmatmul.bf16.gmra.mxu1 %v726_v61 }
  0xc1   : > { %1445 = vmatpush.bf16.msra.mxu3 %v726_v61 }
  0xc5   : > { %1446 = vmatpush.bf16.msra.mxu3 %v725_v54 }
  0xc9   : > { %1447 = vmatpush.bf16.msra.mxu3 %v2897_v13 }
  0xcd   : > { %1448 = vmatpush.bf16.msra.mxu3 %v2865_v60 }
  0xd0   : > { %827 = vmatmul.bf16.gmra.mxu0 %v727_v33  ;;  %960 = vmatmul.bf16.gmra.mxu1 %v727_v33 }
  0xe0   : > { %832 = vmatmul.bf16.gmra.mxu0 %v728_v29  ;;  %965 = vmatmul.bf16.gmra.mxu1 %v728_v29 }
  0xf0   : > { %837 = vmatmul.bf16.gmra.mxu0 %v729_v21  ;;  %970 = vmatmul.bf16.gmra.mxu1 %v729_v21 }
 0x100   : > { %842 = vmatmul.bf16.gmra.mxu0 %v730_v31  ;;  %975 = vmatmul.bf16.gmra.mxu1 %v730_v31 }
 0x10d   : > { %v2976_v62 = vpop.f32.mrf.mxu1 }
 0x115   : > { %v2978_v41 = vpop.f32.mrf.mxu1 }
 0x11d   : > { %v2980_v36 = vpop.f32.mrf.mxu1 }
 0x125   : > { %v948_v46 = vpop.f32.mrf.mxu1 }
 0x12d   : > { %v951_v47 = vpop.f32.mrf.mxu1 }
 0x135   : > { %v953_v48 = vpop.f32.mrf.mxu1 }
 0x13d   : > { %v956_v13 = vpop.f32.mrf.mxu1 }
 0x145   : > { %v958_v50 = vpop.f32.mrf.mxu1 }
 0x14d   : > { %v961_v60 = vpop.f32.mrf.mxu1 }
 0x14e   : > { %v962_v54 = vadd.f32 %v2985_v51, %v961_v60 }
 0x150   : > { %2403 = vtanh.f32 %v962_v54 }
 0x155   : > { %v963_v31 = vpop.f32.mrf.mxu1 }
 0x156   : > { %v964_v56 = vadd.f32 %v2985_v51, %v963_v31  ;;  %v2404_v2 = vpop.eup %2403  ;;  %v808_v31 = vpop.f32.mrf.mxu0 }
 0x158   : > { %2405 = vtanh.f32 %v964_v56 }
 0x15d   : > { %v966_v1 = vpop.f32.mrf.mxu1 }
 0x15e   : > { %v2406_v5 = vpop.eup %2405  ;;  %v967_v61 = vadd.f32 %v2985_v51, %v966_v1  ;;  %v954_v1 = vadd.f32 %v2985_v51, %v953_v48 }
 0x15f   : > { %v1009_v6 = vpack.c.bf16 %v2406_v5, %v2404_v2 }
 0x165   : > { %v968_v14 = vpop.f32.mrf.mxu1 }
 0x166   : > { %v969_v29 = vadd.f32 %v2985_v51, %v968_v14 }
 0x16d   : > { %v971_v15 = vpop.f32.mrf.mxu1 }
 0x16e   : > { %v972_v24 = vadd.f32 %v2985_v51, %v971_v15  ;;  %v810_v15 = vpop.f32.mrf.mxu0 }
 0x175   : > { %v973_v18 = vpop.f32.mrf.mxu1 }
 0x176   : > { %v974_v23 = vadd.f32 %v2985_v51, %v973_v18  ;;  %v959_v18 = vadd.f32 %v2985_v51, %v958_v50 }
 0x17d   : > { %v976_v19 = vpop.f32.mrf.mxu1 }
 0x17e   : > { %v977_v20 = vadd.f32 %v2985_v51, %v976_v19  ;;  %v957_v19 = vadd.f32 %v2985_v51, %v956_v13  ;;  %v947_v13 = vadd.f32 %v2985_v51, %v2980_v36 }
 0x180   : > { %2407 = vtanh.f32 %v977_v20  ;;  %v813_v20 = vpop.f32.mrf.mxu0 }
 0x185   : > { %v978_v21 = vpop.f32.mrf.mxu1 }
 0x186   : > { %v979_v22 = vadd.f32 %v2985_v51, %v978_v21  ;;  %v2408_v25 = vpop.eup %2407  ;;  %v952_v21 = vadd.f32 %v2985_v51, %v951_v47  ;;  %v944_v47 = vadd.f32 %v2985_v51, %v2978_v41 }
 0x188   : > { %2409 = vtanh.f32 %v979_v22 }
 0x189   : > { %2411 = vtanh.f32 %v974_v23 }
 0x18a   : > { %2413 = vtanh.f32 %v972_v24  ;;  %v949_v24 = vadd.f32 %v2985_v51, %v948_v46  ;;  %v3009_v46 = vld [vmem:[%s3338_s5] ss:$0 sm:$0xff] }
 0x18b   : > { %2415 = vtanh.f32 %v969_v29 }
 0x18c   : > { %2417 = vtanh.f32 %v967_v61  ;;  %v811_v61 = vadd.f32 %v3009_v46, %v810_v15 }
 0x18d   : > { %2419 = vtanh.f32 %v959_v18 }
 0x18e   : > { %v2410_v38 = vpop.eup %2409  ;;  %2421 = vtanh.f32 %v957_v19  ;;  %v814_v19 = vadd.f32 %v3009_v46, %v813_v20 }
 0x18f   : > { %v1012_v27 = vpack.c.bf16 %v2410_v38, %v2408_v25  ;;  %v2412_v33 = vpop.eup %2411  ;;  %2423 = vtanh.f32 %v954_v1  ;;  %v815_v38 = vpop.f32.mrf.mxu0 }
 0x190   : > { %v2414_v60 = vpop.eup %2413  ;;  %2425 = vtanh.f32 %v952_v21  ;;  %v816_v18 = vadd.f32 %v3009_v46, %v815_v38 }
 0x191   : > { %1013 = vmatpush.bf16.xpose.msra.mxu2 %v1012_v27  ;;  %v1011_v54 = vpack.c.bf16 %v2412_v33, %v2414_v60  ;;  %v2416_v56 = vpop.eup %2415  ;;  %2427 = vtanh.f32 %v949_v24  ;;  %v942_v27 = vadd.f32 %v2985_v51, %v2976_v62  ;;  %v809_v60 = vadd.f32 %v3009_v46, %v808_v31 }
 0x192   : > { %v2418_v2 = vpop.eup %2417  ;;  %2429 = vtanh.f32 %v947_v13 }
 0x193   : > { %v1010_v5 = vpack.c.bf16 %v2416_v56, %v2418_v2  ;;  %v2420_v14 = vpop.eup %2419  ;;  %2431 = vtanh.f32 %v944_v47 }
 0x194   : > { %v2422_v22 = vpop.eup %2421  ;;  %2433 = vtanh.f32 %v942_v27 }
 0x195   : > { %v1008_v23 = vpack.c.bf16 %v2420_v14, %v2422_v22  ;;  %v2424_v25 = vpop.eup %2423  ;;  %2435 = vtanh.f32 %v811_v61 }
 0x196   : > { %v2426_v50 = vpop.eup %2425  ;;  %2437 = vtanh.f32 %v809_v60 }
 0x197   : > { %v2428_v48 = vpop.eup %2427  ;;  %v818_v33 = vpop.f32.mrf.mxu0  ;;  %2439 = vtanh.f32 %v816_v18 }
 0x198   : > { %v2430_v29 = vpop.eup %2429  ;;  %2441 = vtanh.f32 %v814_v19 }
 0x199   : > { %1014 = vmatpush.bf16.xpose.msra.mxu2 %v1011_v54  ;;  %v1006_v36 = vpack.c.bf16 %v2428_v48, %v2430_v29  ;;  %v2432_v41 = vpop.eup %2431 }
 0x19a   : > { %v2434_v54 = vpop.eup %2433 }
 0x19b   : > { %v1005_v62 = vpack.c.bf16 %v2432_v41, %v2434_v54  ;;  %v2436_v56 = vpop.eup %2435 }
 0x19c   : > { %v2438_v2 = vpop.eup %2437 }
 0x19d   : > { %v2440_v15 = vpop.eup %2439 }
 0x19e   : > { %v2442_v31 = vpop.eup %2441 }
 0x19f   : > { %v820_v51 = vpop.f32.mrf.mxu0  ;;  %v998_v21 = vpack.c.bf16 %v2440_v15, %v2442_v31 }
 0x1a0   : > { %v821_v22 = vadd.f32 %v3009_v46, %v820_v51 }
 0x1a1   : > { %1015 = vmatpush.bf16.xpose.msra.mxu2 %v1010_v5  ;;  %v997_v5 = vpack.c.bf16 %v2436_v56, %v2438_v2 }
 0x1a2   : > { %2443 = vtanh.f32 %v821_v22 }
 0x1a7   : > { %v823_v1 = vpop.f32.mrf.mxu0 }
 0x1a9   : > { %1016 = vmatpush.bf16.xpose.msra.mxu2 %v1009_v6  ;;  %v1007_v6 = vpack.c.bf16 %v2424_v25, %v2426_v50  ;;  %v2444_v25 = vpop.eup %2443 }
 0x1af   : > { %v825_v14 = vpop.f32.mrf.mxu0 }
 0x1b0   : > { %v826_v20 = vadd.f32 %v3009_v46, %v825_v14 }
 0x1b1   : > { %1017 = vmatpush.bf16.xpose.msra.mxu2 %v1008_v23  ;;  %v819_v23 = vadd.f32 %v3009_v46, %v818_v33 }
 0x1b3   : > { %2445 = vtanh.f32 %v819_v23 }
 0x1b4   : > { %2447 = vtanh.f32 %v826_v20 }
 0x1b7   : > { %v828_v24 = vpop.f32.mrf.mxu0 }
 0x1b8   : > { %v829_v33 = vadd.f32 %v3009_v46, %v828_v24 }
 0x1b9   : > { %1018 = vmatpush.bf16.xpose.msra.mxu2 %v1007_v6  ;;  %v2446_v13 = vpop.eup %2445  ;;  %v824_v6 = vadd.f32 %v3009_v46, %v823_v1 }
 0x1ba   : > { %v999_v50 = vpack.c.bf16 %v2444_v25, %v2446_v13  ;;  %v2448_v47 = vpop.eup %2447 }
 0x1bb   : > { %2449 = vtanh.f32 %v824_v6 }
 0x1bf   : > { %v830_v38 = vpop.f32.mrf.mxu0 }
 0x1c1   : > { %1019 = vmatpush.bf16.xpose.msra.mxu2 %v1006_v36  ;;  %v2450_v27 = vpop.eup %2449  ;;  %v831_v36 = vadd.f32 %v3009_v46, %v830_v38 }
 0x1c2   : > { %v1000_v29 = vpack.c.bf16 %v2448_v47, %v2450_v27 }
 0x1c3   : > { %2451 = vtanh.f32 %v831_v36 }
 0x1c4   : > { %2453 = vtanh.f32 %v829_v33 }
 0x1c7   : > { %v833_v48 = vpop.f32.mrf.mxu0 }
 0x1c8   : > { %v834_v56 = vadd.f32 %v3009_v46, %v833_v48 }
 0x1c9   : > { %1020 = vmatpush.bf16.xpose.msra.mxu2 %v1005_v62  ;;  %v2452_v60 = vpop.eup %2451 }
 0x1ca   : > { %v2454_v41 = vpop.eup %2453 }
 0x1cb   : > { %v1001_v54 = vpack.c.bf16 %v2452_v60, %v2454_v41 }
 0x1cf   : > { %v835_v61 = vpop.f32.mrf.mxu0 }
 0x1d0   : > { %1021 = vmatmul.bf16.vlgmr.msra.gmra.mxu2 %v997_v5  ;;  %v836_v51 = vadd.f32 %v3009_v46, %v835_v61 }
 0x1d2   : > { %2455 = vtanh.f32 %v836_v51 }
 0x1d3   : > { %2457 = vtanh.f32 %v834_v56 }
 0x1d7   : > { %v838_v62 = vpop.f32.mrf.mxu0 }
 0x1d8   : > { %v2456_v5 = vpop.eup %2455  ;;  %v839_v15 = vadd.f32 %v3009_v46, %v838_v62 }
 0x1d9   : > { %v2458_v18 = vpop.eup %2457 }
 0x1da   : > { %v1002_v19 = vpack.c.bf16 %v2456_v5, %v2458_v18 }
 0x1df   : > { %v840_v2 = vpop.f32.mrf.mxu0 }
 0x1e0   : > { %1026 = vmatmul.bf16.gmra.mxu2 %v998_v21  ;;  %v841_v1 = vadd.f32 %v3009_v46, %v840_v2 }
 0x1e2   : > { %2459 = vtanh.f32 %v841_v1 }
 0x1e3   : > { %2461 = vtanh.f32 %v839_v15 }
 0x1e7   : > { %v843_v31 = vpop.f32.mrf.mxu0 }
 0x1e8   : > { %v2460_v14 = vpop.eup %2459  ;;  %v844_v25 = vadd.f32 %v3009_v46, %v843_v31 }
 0x1e9   : > { %v2462_v21 = vpop.eup %2461 }
 0x1ea   : > { %v1003_v23 = vpack.c.bf16 %v2460_v14, %v2462_v21 }
 0x1ef   : > { %v845_v22 = vpop.f32.mrf.mxu0 }
 0x1f0   : > { %1031 = vmatmul.bf16.gmra.mxu2 %v999_v50  ;;  %v846_v24 = vadd.f32 %v3009_v46, %v845_v22 }
 0x1f2   : > { %2463 = vtanh.f32 %v846_v24 }
 0x1f3   : > { %2465 = vtanh.f32 %v844_v25 }
 0x1f8   : > { %v2464_v13 = vpop.eup %2463 }
 0x1f9   : > { %v2466_v50 = vpop.eup %2465 }
 0x1fa   : > { %v1004_v20 = vpack.c.bf16 %v2464_v13, %v2466_v50 }
 0x200   : > { %1036 = vmatmul.bf16.gmra.mxu2 %v1000_v29 }
 0x210   : > { %1041 = vmatmul.bf16.gmra.mxu2 %v1001_v54 }
 0x220   : > { %1046 = vmatmul.bf16.gmra.mxu2 %v1002_v19 }
 0x230   : > { %1051 = vmatmul.bf16.gmra.mxu2 %v1003_v23 }
 0x240   : > { %1056 = vmatmul.bf16.gmra.mxu2 %v1004_v20 }
 0x253   : > { %v1022_v38 = vpop.f32.mrf.mxu2 }
 0x254   : > { %v1062_v6 = vmul.f32 0.17677669, %v1022_v38  ;;  %v2218_v47 = vmul.f32 -0.17677669, %v1022_v38 }
 0x256   : > { %1078 = vst [vmem:[%s3031_s29] sm:$0xff] %v1062_v6  ;;  %v1129_v48 = vmul.f32 1.442695, %v2218_v47 }
 0x258   : > { %2467 = vpow2.f32 %v1129_v48 }
 0x25b   : > { %v1024_v46 = vpop.f32.mrf.mxu2 }
 0x25c   : > { %v1063_v27 = vmul.f32 0.17677669, %v1024_v46  ;;  %v2219_v29 = vmul.f32 -0.17677669, %v1024_v46 }
 0x25e   : > { %v2468_v36 = vpop.eup %2467  ;;  %1079 = vst [vmem:[%s3031_s29 + $0x8] sm:$0xff] %v1063_v27  ;;  %v1131_v33 = vmul.f32 1.442695, %v2219_v29 }
 0x25f   : > { %v1161_v61 = vadd.f32 1.0, %v2468_v36 }
 0x260   : > { %2469 = vpow2.f32 %v1131_v33 }
 0x261   : > { %2471 = vrcp.f32 %v1161_v61  ;;  %vm1182_vm1 = vweird.f32 %v1161_v61  ;;  %v1188_v13 = vand.u32 2147483648, %v1161_v61  ;;  %v1186_v20 = vand.u32 2147483647, %v1161_v61 }
 0x263   : > { %v1027_v60 = vpop.f32.mrf.mxu2  ;;  %v1189_v33 = vor.u32 1.1754944e-38, %v1188_v13  ;;  %vm1187_vm4 = vcmp.eq.f32.partialorder %v1186_v20, 8.507059e+37 }
 0x264   : > { %v1064_v41 = vmul.f32 0.17677669, %v1027_v60  ;;  %v2220_v54 = vmul.f32 -0.17677669, %v1027_v60 }
 0x266   : > { %v2470_v62 = vpop.eup %2469  ;;  %1080 = vst [vmem:[%s3031_s29 + $0x10] sm:$0xff] %v1064_v41  ;;  %v1133_v51 = vmul.f32 1.442695, %v2220_v54 }
 0x267   : > { %v2472_v56 = vpop.eup %2471  ;;  %v1162_v2 = vadd.f32 1.0, %v2470_v62 }
 0x268   : > { %2473 = vpow2.f32 %v1133_v51  ;;  %v1178_v5 = vmul.f32 %v2472_v56, %v1161_v61  ;;  %vm1183_vm0 = vweird.f32 %v2472_v56 }
 0x269   : > { %2475 = vrcp.f32 %v1162_v2  ;;  %vm3040_vm2 = vmor %vm1182_vm1, %vm1183_vm0  ;;  %v1201_v48 = vand.u32 2147483647, %v1162_v2  ;;  %v1203_v46 = vand.u32 2147483648, %v1162_v2  ;;  %vm1197_vm5 = vweird.f32 %v1162_v2 }
 0x26a   : > { %v1179_v18 = vsub.f32 1.0, %v1178_v5 }
 0x26b   : > { %v1029_v19 = vpop.f32.mrf.mxu2  ;;  %v1204_v5 = vor.u32 1.1754944e-38, %v1203_v46  ;;  %vm1202_vm7 = vcmp.eq.f32.partialorder %v1201_v48, 8.507059e+37 }
 0x26c   : > { %v1065_v1 = vmul.f32 0.17677669, %v1029_v19  ;;  %v2221_v15 = vmul.f32 -0.17677669, %v1029_v19  ;;  %v1180_v31 = vmul.f32 %v2472_v56, %v1179_v18 }
 0x26e   : > { %v2474_v14 = vpop.eup %2473  ;;  %1081 = vst [vmem:[%s3031_s29 + $0x18] sm:$0xff] %v1065_v1  ;;  %v1135_v21 = vmul.f32 1.442695, %v2221_v15  ;;  %v1181_v24 = vadd.f32 %v2472_v56, %v1180_v31 }
 0x26f   : > { %v2476_v22 = vpop.eup %2475  ;;  %v3037_v23 = vadd.f32 1.0, %v2474_v14 }
 0x270   : > { %2477 = vpow2.f32 %v1135_v21  ;;  %v1193_v25 = vmul.f32 %v2476_v22, %v1162_v2  ;;  %v1185_v47 = vsel %vm3040_vm2, %v2472_v56, %v1181_v24  ;;  %vm1198_vm3 = vweird.f32 %v2476_v22 }
 0x271   : > { %2479 = vrcp.f32 %v3037_v23  ;;  %v1190_v51 = vsel %vm1187_vm4, %v1189_v33, %v1185_v47  ;;  %vm1199_vm6 = vmor %vm1197_vm5, %vm1198_vm3  ;;  %vm1212_vm9 = vweird.f32 %v3037_v23  ;;  %v1216_v47 = vand.u32 2147483647, %v3037_v23 }
 0x272   : > { %v1194_v38 = vsub.f32 1.0, %v1193_v25  ;;  %v1417_v1 = vmul.f32 %v1190_v51, %v2832_v43  ;;  %v1218_v43 = vand.u32 2147483648, %v3037_v23 }
 0x273   : > { %v1032_v6 = vpop.f32.mrf.mxu2  ;;  %vm1217_vm12 = vcmp.eq.f32.partialorder %v1216_v47, 8.507059e+37 }
 0x274   : > { %v1066_v27 = vmul.f32 0.17677669, %v1032_v6  ;;  %v2222_v29 = vmul.f32 -0.17677669, %v1032_v6  ;;  %v1195_v36 = vmul.f32 %v2476_v22, %v1194_v38 }
 0x276   : > { %v2478_v60 = vpop.eup %2477  ;;  %1082 = vst [vmem:[%s3031_s29 + $0x20] sm:$0xff] %v1066_v27  ;;  %v1137_v41 = vmul.f32 1.442695, %v2222_v29  ;;  %v1196_v54 = vadd.f32 %v2476_v22, %v1195_v36 }
 0x277   : > { %v2480_v62 = vpop.eup %2479  ;;  %v1164_v61 = vadd.f32 1.0, %v2478_v60 }
 0x278   : > { %2481 = vpow2.f32 %v1137_v41  ;;  %v1200_v56 = vsel %vm1199_vm6, %v2476_v22, %v1196_v54  ;;  %v1208_v18 = vmul.f32 %v2480_v62, %v3037_v23  ;;  %vm1213_vm8 = vweird.f32 %v2480_v62 }
 0x279   : > { %2483 = vrcp.f32 %v1164_v61  ;;  %v1205_v19 = vsel %vm1202_vm7, %v1204_v5, %v1200_v56  ;;  %vm3056_vm10 = vmor %vm1212_vm9, %vm1213_vm8  ;;  %v1231_v29 = vand.u32 2147483647, %v1164_v61  ;;  %v1233_v36 = vand.u32 2147483648, %v1164_v61 }
 0x27a   : > { %v1418_v15 = vmul.f32 %v1205_v19, %v2854_v55  ;;  %v1209_v31 = vsub.f32 1.0, %v1208_v18  ;;  %v1219_v54 = vor.u32 1.1754944e-38, %v1218_v43  ;;  %vm1227_vm13 = vweird.f32 %v1164_v61 }
 0x27b   : > { %v1034_v14 = vpop.f32.mrf.mxu2  ;;  %vm1232_vm15 = vcmp.eq.f32.partialorder %v1231_v29, 8.507059e+37 }
 0x27c   : > { %v1067_v2 = vmul.f32 0.17677669, %v1034_v14  ;;  %v2223_v21 = vmul.f32 -0.17677669, %v1034_v14  ;;  %v1433_v24 = vpack.c.bf16 %v1418_v15, %v1417_v1  ;;  %v1210_v25 = vmul.f32 %v2480_v62, %v1209_v31 }
 0x27d   : > { %v1234_v1 = vor.u32 1.1754944e-38, %v1233_v36 }
 0x27e   : > { %v2482_v13 = vpop.eup %2481  ;;  %1083 = vst [vmem:[%s3031_s29 + $0x28] sm:$0xff] %v1067_v2  ;;  %v1139_v50 = vmul.f32 1.442695, %v2223_v21  ;;  %1449 = vmatmul.bf16.vlgmr.msra.gmra.mxu3 %v1433_v24  ;;  %v1211_v38 = vadd.f32 %v2480_v62, %v1210_v25 }
 0x27f   : > { %v2484_v22 = vpop.eup %2483  ;;  %v3051_v20 = vadd.f32 1.0, %v2482_v13 }
 0x280   : > { %2485 = vpow2.f32 %v1139_v50  ;;  %v1223_v6 = vmul.f32 %v2484_v22, %v1164_v61  ;;  %v1215_v27 = vsel %vm3056_vm10, %v2480_v62, %v1211_v38  ;;  %vm1228_vm11 = vweird.f32 %v2484_v22 }
 0x281   : > { %2487 = vrcp.f32 %v3051_v20  ;;  %v1220_v19 = vsel %vm1217_vm12, %v1219_v54, %v1215_v27  ;;  %vm1229_vm14 = vmor %vm1227_vm13, %vm1228_vm11  ;;  %vm1242_vm1 = vweird.f32 %v3051_v20 }
 0x282   : > { %v1224_v48 = vsub.f32 1.0, %v1223_v6  ;;  %v1419_v14 = vmul.f32 %v1220_v19, %v2829_v42  ;;  %v1248_v42 = vand.u32 2147483648, %v3051_v20 }
 0x283   : > { %v1037_v46 = vpop.f32.mrf.mxu2 }
 0x284   : > { %v1068_v33 = vmul.f32 0.17677669, %v1037_v46  ;;  %v2224_v60 = vmul.f32 -0.17677669, %v1037_v46  ;;  %v1225_v41 = vmul.f32 %v2484_v22, %v1224_v48  ;;  %v1246_v48 = vand.u32 2147483647, %v3051_v20 }
 0x286   : > { %v2486_v51 = vpop.eup %2485  ;;  %1084 = vst [vmem:[%s3031_s29 + $0x30] sm:$0xff] %v1068_v33  ;;  %v1141_v5 = vmul.f32 1.442695, %v2224_v60  ;;  %v1226_v56 = vadd.f32 %v2484_v22, %v1225_v41  ;;  %vm1247_vm4 = vcmp.eq.f32.partialorder %v1246_v48, 8.507059e+37 }
 0x287   : > { %v2488_v18 = vpop.eup %2487  ;;  %v1166_v23 = vadd.f32 1.0, %v2486_v51  ;;  %v1249_v51 = vor.u32 1.1754944e-38, %v1248_v42 }
 0x288   : > { %2489 = vpow2.f32 %v1141_v5  ;;  %v1230_v62 = vsel %vm1229_vm14, %v2484_v22, %v1226_v56  ;;  %v1238_v15 = vmul.f32 %v2488_v18, %v3051_v20  ;;  %vm1243_vm0 = vweird.f32 %v2488_v18 }
 0x289   : > { %2491 = vrcp.f32 %v1166_v23  ;;  %v1235_v31 = vsel %vm1232_vm15, %v1234_v1, %v1230_v62  ;;  %vm3073_vm2 = vmor %vm1242_vm1, %vm1243_vm0  ;;  %v1261_v36 = vand.u32 2147483647, %v1166_v23  ;;  %v1263_v33 = vand.u32 2147483648, %v1166_v23 }
 0x28a   : > { %v1420_v2 = vmul.f32 %v1235_v31, %v2851_v53  ;;  %v1239_v21 = vsub.f32 1.0, %v1238_v15  ;;  %vm1257_vm5 = vweird.f32 %v1166_v23 }
 0x28b   : > { %v1039_v24 = vpop.f32.mrf.mxu2  ;;  %v1264_v15 = vor.u32 1.1754944e-38, %v1263_v33  ;;  %vm1262_vm7 = vcmp.eq.f32.partialorder %v1261_v36, 8.507059e+37 }
 0x28c   : > { %v1069_v61 = vmul.f32 0.17677669, %v1039_v24  ;;  %v2225_v25 = vmul.f32 -0.17677669, %v1039_v24  ;;  %v1434_v13 = vpack.c.bf16 %v1420_v2, %v1419_v14  ;;  %v1240_v50 = vmul.f32 %v2488_v18, %v1239_v21 }
 0x28e   : > { %v2490_v38 = vpop.eup %2489  ;;  %1085 = vst [vmem:[%s3031_s29 + $0x38] sm:$0xff] %v1069_v61  ;;  %v1143_v6 = vmul.f32 1.442695, %v2225_v25  ;;  %1454 = vmatmul.bf16.gmra.mxu3 %v1434_v13  ;;  %v1241_v55 = vadd.f32 %v2488_v18, %v1240_v50 }
 0x28f   : > { %v2492_v22 = vpop.eup %2491  ;;  %v3068_v43 = vadd.f32 1.0, %v2490_v38 }
 0x290   : > { %2493 = vpow2.f32 %v1143_v6  ;;  %v1253_v47 = vmul.f32 %v2492_v22, %v1166_v23  ;;  %v1245_v29 = vsel %vm3073_vm2, %v2488_v18, %v1241_v55  ;;  %vm1258_vm3 = vweird.f32 %v2492_v22 }
 0x291   : > { %2495 = vrcp.f32 %v3068_v43  ;;  %v1250_v62 = vsel %vm1247_vm4, %v1249_v51, %v1245_v29  ;;  %vm1259_vm6 = vmor %vm1257_vm5, %vm1258_vm3  ;;  %vm1272_vm9 = vweird.f32 %v3068_v43  ;;  %v1276_v53 = vand.u32 2147483647, %v3068_v43 }
 0x292   : > { %v1254_v46 = vsub.f32 1.0, %v1253_v47  ;;  %v1421_v2 = vmul.f32 %v1250_v62, %v2811_v35  ;;  %v1278_v35 = vand.u32 2147483648, %v3068_v43 }
 0x293   : > { %v1042_v27 = vpop.f32.mrf.mxu2  ;;  %vm1277_vm12 = vcmp.eq.f32.partialorder %v1276_v53, 8.507059e+37 }
 0x294   : > { %v1070_v60 = vmul.f32 0.17677669, %v1042_v27  ;;  %v2226_v41 = vmul.f32 -0.17677669, %v1042_v27  ;;  %v1255_v54 = vmul.f32 %v2492_v22, %v1254_v46 }
 0x296   : > { %v2494_v5 = vpop.eup %2493  ;;  %1086 = vst [vmem:[%s3031_s29 + $0x40] sm:$0xff] %v1070_v60  ;;  %v1145_v56 = vmul.f32 1.442695, %v2226_v41  ;;  %v1256_v19 = vadd.f32 %v2492_v22, %v1255_v54  ;;  %v1279_v54 = vor.u32 1.1754944e-38, %v1278_v35 }
 0x297   : > { %v2496_v1 = vpop.eup %2495  ;;  %v1168_v20 = vadd.f32 1.0, %v2494_v5 }
 0x298   : > { %2497 = vpow2.f32 %v1145_v56  ;;  %v1260_v18 = vsel %vm1259_vm6, %v2492_v22, %v1256_v19  ;;  %v1268_v31 = vmul.f32 %v2496_v1, %v3068_v43  ;;  %vm1273_vm8 = vweird.f32 %v2496_v1 }
 0x299   : > { %2499 = vrcp.f32 %v1168_v20  ;;  %v1265_v14 = vsel %vm1262_vm7, %v1264_v15, %v1260_v18  ;;  %vm3090_vm10 = vmor %vm1272_vm9, %vm1273_vm8  ;;  %v1291_v29 = vand.u32 2147483647, %v1168_v20  ;;  %v1293_v36 = vand.u32 2147483648, %v1168_v20 }
 0x29a   : > { %v1422_v21 = vmul.f32 %v1265_v14, %v2814_v37  ;;  %v1269_v24 = vsub.f32 1.0, %v1268_v31  ;;  %vm1287_vm13 = vweird.f32 %v1168_v20 }
 0x29b   : > { %v1044_v61 = vpop.f32.mrf.mxu2  ;;  %v1294_v15 = vor.u32 1.1754944e-38, %v1293_v36  ;;  %vm1292_vm15 = vcmp.eq.f32.partialorder %v1291_v29, 8.507059e+37 }
 0x29c   : > { %v1071_v23 = vmul.f32 0.17677669, %v1044_v61  ;;  %v2227_v25 = vmul.f32 -0.17677669, %v1044_v61  ;;  %v1435_v13 = vpack.c.bf16 %v1422_v21, %v1421_v2  ;;  %v1270_v50 = vmul.f32 %v2496_v1, %v1269_v24 }
 0x29e   : > { %v2498_v38 = vpop.eup %2497  ;;  %1087 = vst [vmem:[%s3031_s29 + $0x48] sm:$0xff] %v1071_v23  ;;  %v1147_v6 = vmul.f32 1.442695, %v2227_v25  ;;  %1459 = vmatmul.bf16.gmra.mxu3 %v1435_v13  ;;  %v1271_v47 = vadd.f32 %v2496_v1, %v1270_v50 }
 0x29f   : > { %v2500_v22 = vpop.eup %2499  ;;  %v3085_v55 = vadd.f32 1.0, %v2498_v38 }
 0x2a0   : > { %2501 = vpow2.f32 %v1147_v6  ;;  %v1283_v42 = vmul.f32 %v2500_v22, %v1168_v20  ;;  %v1275_v27 = vsel %vm3090_vm10, %v2496_v1, %v1271_v47  ;;  %vm1288_vm11 = vweird.f32 %v2500_v22 }
 0x2a1   : > { %2503 = vrcp.f32 %v3085_v55  ;;  %v1280_v62 = vsel %vm1277_vm12, %v1279_v54, %v1275_v27  ;;  %vm1289_vm14 = vmor %vm1287_vm13, %vm1288_vm11  ;;  %vm1302_vm1 = vweird.f32 %v3085_v55 }
 0x2a2   : > { %v1284_v48 = vsub.f32 1.0, %v1283_v42  ;;  %v1423_v14 = vmul.f32 %v1280_v62, %v2879_v0  ;;  %v1306_v42 = vand.u32 2147483647, %v3085_v55 }
 0x2a3   : > { %v1047_v46 = vpop.f32.mrf.mxu2 }
 0x2a4   : > { %v1072_v33 = vmul.f32 0.17677669, %v1047_v46  ;;  %v2228_v60 = vmul.f32 -0.17677669, %v1047_v46  ;;  %v1285_v41 = vmul.f32 %v2500_v22, %v1284_v48  ;;  %vm1307_vm4 = vcmp.eq.f32.partialorder %v1306_v42, 8.507059e+37 }
 0x2a6   : > { %v2502_v51 = vpop.eup %2501  ;;  %1088 = vst [vmem:[%s3031_s29 + $0x50] sm:$0xff] %v1072_v33  ;;  %v1149_v5 = vmul.f32 1.442695, %v2228_v60  ;;  %v1286_v56 = vadd.f32 %v2500_v22, %v1285_v41 }
 0x2a7   : > { %v2504_v19 = vpop.eup %2503  ;;  %v1170_v43 = vadd.f32 1.0, %v2502_v51 }
 0x2a8   : > { %2505 = vpow2.f32 %v1149_v5  ;;  %v1290_v1 = vsel %vm1289_vm14, %v2500_v22, %v1286_v56  ;;  %v1298_v18 = vmul.f32 %v2504_v19, %v3085_v55  ;;  %vm1303_vm0 = vweird.f32 %v2504_v19 }
 0x2a9   : > { %2507 = vrcp.f32 %v1170_v43  ;;  %v1295_v31 = vsel %vm1292_vm15, %v1294_v15, %v1290_v1  ;;  %vm3107_vm2 = vmor %vm1302_vm1, %vm1303_vm0  ;;  %v1321_v48 = vand.u32 2147483647, %v1170_v43  ;;  %v1323_v46 = vand.u32 2147483648, %v1170_v43  ;;  %v2360_v1 = vld [vmem:[%s3341_s8 + $0x38] sm:$0xff] }
 0x2aa   : > { %v1424_v2 = vmul.f32 %v1295_v31, %v2875_v63  ;;  %v1299_v21 = vsub.f32 1.0, %v1298_v18  ;;  %v1308_v63 = vand.u32 2147483648, %v3085_v55  ;;  %vm1317_vm5 = vweird.f32 %v1170_v43  ;;  %1582 = vmatpush.bf16.msrb.mxu0 %v2360_v1 }
 0x2ab   : > { %v1049_v24 = vpop.f32.mrf.mxu2  ;;  %v1324_v56 = vor.u32 1.1754944e-38, %v1323_v46  ;;  %vm1322_vm7 = vcmp.eq.f32.partialorder %v1321_v48, 8.507059e+37 }
 0x2ac   : > { %v1073_v20 = vmul.f32 0.17677669, %v1049_v24  ;;  %v2229_v61 = vmul.f32 -0.17677669, %v1049_v24  ;;  %v1436_v23 = vpack.c.bf16 %v1424_v2, %v1423_v14  ;;  %v1300_v25 = vmul.f32 %v2504_v19, %v1299_v21 }
 0x2ad   : > { %v1309_v33 = vor.u32 1.1754944e-38, %v1308_v63 }
 0x2ae   : > { %v2506_v13 = vpop.eup %2505  ;;  %1089 = vst [vmem:[%s3031_s29 + $0x58] sm:$0xff] %v1073_v20  ;;  %v1151_v50 = vmul.f32 1.442695, %v2229_v61  ;;  %1464 = vmatmul.bf16.gmra.mxu3 %v1436_v23  ;;  %v1301_v22 = vadd.f32 %v2504_v19, %v1300_v25  ;;  %v2359_v25 = vld [vmem:[%s3341_s8 + $0x30] sm:$0xff] }
 0x2af   : > { %v2508_v38 = vpop.eup %2507  ;;  %v3102_v6 = vadd.f32 1.0, %v2506_v13  ;;  %1583 = vmatpush.bf16.msrb.mxu0 %v2359_v25 }
 0x2b0   : > { %2509 = vpow2.f32 %v1151_v50  ;;  %v1313_v47 = vmul.f32 %v2508_v38, %v1170_v43  ;;  %v1305_v53 = vsel %vm3107_vm2, %v2504_v19, %v1301_v22  ;;  %vm1318_vm3 = vweird.f32 %v2508_v38 }
 0x2b1   : > { %2511 = vrcp.f32 %v3102_v6  ;;  %v1310_v5 = vsel %vm1307_vm4, %v1309_v33, %v1305_v53  ;;  %vm1319_vm6 = vmor %vm1317_vm5, %vm1318_vm3  ;;  %vm1332_vm9 = vweird.f32 %v3102_v6 }
 0x2b2   : > { %v1314_v35 = vsub.f32 1.0, %v1313_v47  ;;  %v1425_v18 = vmul.f32 %v1310_v5, %v2820_v39  ;;  %v1336_v47 = vand.u32 2147483647, %v3102_v6 }
 0x2b3   : > { %v1052_v37 = vpop.f32.mrf.mxu2 }
 0x2b4   : > { %v1074_v27 = vmul.f32 0.17677669, %v1052_v37  ;;  %v2230_v29 = vmul.f32 -0.17677669, %v1052_v37  ;;  %v1315_v36 = vmul.f32 %v2508_v38, %v1314_v35  ;;  %vm1337_vm12 = vcmp.eq.f32.partialorder %v1336_v47, 8.507059e+37 }
 0x2b6   : > { %v2510_v60 = vpop.eup %2509  ;;  %1090 = vst [vmem:[%s3031_s29 + $0x60] sm:$0xff] %v1074_v27  ;;  %v1153_v41 = vmul.f32 1.442695, %v2230_v29  ;;  %v1316_v54 = vadd.f32 %v2508_v38, %v1315_v36 }
 0x2b7   : > { %v2512_v51 = vpop.eup %2511  ;;  %v1172_v55 = vadd.f32 1.0, %v2510_v60 }
 0x2b8   : > { %2513 = vpow2.f32 %v1153_v41  ;;  %v1320_v19 = vsel %vm1319_vm6, %v2508_v38, %v1316_v54  ;;  %v1328_v62 = vmul.f32 %v2512_v51, %v3102_v6  ;;  %vm1333_vm8 = vweird.f32 %v2512_v51 }
 0x2b9   : > { %2515 = vrcp.f32 %v1172_v55  ;;  %v1325_v15 = vsel %vm1322_vm7, %v1324_v56, %v1320_v19  ;;  %v1338_v38 = vand.u32 2147483648, %v3102_v6  ;;  %vm3130_vm10 = vmor %vm1332_vm9, %vm1333_vm8  ;;  %v1351_v35 = vand.u32 2147483647, %v1172_v55 }
 0x2ba   : > { %v1426_v43 = vmul.f32 %v1325_v15, %v2893_v12  ;;  %v1329_v31 = vsub.f32 1.0, %v1328_v62  ;;  %v1353_v37 = vand.u32 2147483648, %v1172_v55  ;;  %vm1347_vm13 = vweird.f32 %v1172_v55 }
 0x2bb   : > { %v1054_v14 = vpop.f32.mrf.mxu2  ;;  %v1339_v27 = vor.u32 1.1754944e-38, %v1338_v38  ;;  %vm1352_vm15 = vcmp.eq.f32.partialorder %v1351_v35, 8.507059e+37 }
 0x2bc   : > { %v1075_v2 = vmul.f32 0.17677669, %v1054_v14  ;;  %v2231_v21 = vmul.f32 -0.17677669, %v1054_v14  ;;  %v1437_v24 = vpack.c.bf16 %v1426_v43, %v1425_v18  ;;  %v1330_v20 = vmul.f32 %v2512_v51, %v1329_v31 }
 0x2bd   : > { %v1354_v54 = vor.u32 1.1754944e-38, %v1353_v37 }
 0x2be   : > { %v2514_v61 = vpop.eup %2513  ;;  %1091 = vst [vmem:[%s3031_s29 + $0x68] sm:$0xff] %v1075_v2  ;;  %v1155_v23 = vmul.f32 1.442695, %v2231_v21  ;;  %1469 = vmatmul.bf16.gmra.mxu3 %v1437_v24  ;;  %v1331_v39 = vadd.f32 %v2512_v51, %v1330_v20  ;;  %v2358_v21 = vld [vmem:[%s3341_s8 + $0x28] sm:$0xff] }
 0x2bf   : > { %v2516_v13 = vpop.eup %2515  ;;  %v3125_v50 = vadd.f32 1.0, %v2514_v61  ;;  %1584 = vmatpush.bf16.msrb.mxu0 %v2358_v21  ;;  %v2357_v61 = vld [vmem:[%s3341_s8 + $0x20] sm:$0xff] }
 0x2c0   : > { %2517 = vpow2.f32 %v1155_v23  ;;  %v1343_v12 = vmul.f32 %v2516_v13, %v1172_v55  ;;  %v1335_v42 = vsel %vm3130_vm10, %v2512_v51, %v1331_v39  ;;  %vm1348_vm11 = vweird.f32 %v2516_v13 }
 0x2c1   : > { %2519 = vrcp.f32 %v3125_v50  ;;  %v1340_v41 = vsel %vm1337_vm12, %v1339_v27, %v1335_v42  ;;  %vm1349_vm14 = vmor %vm1347_vm13, %vm1348_vm11  ;;  %v1368_v23 = vand.u32 2147483648, %v3125_v50  ;;  %vm1362_vm1 = vweird.f32 %v3125_v50 }
 0x2c2   : > { %v1344_v63 = vsub.f32 1.0, %v1343_v12  ;;  %v1427_v19 = vmul.f32 %v1340_v41, %v2890_v11  ;;  %v1366_v25 = vand.u32 2147483647, %v3125_v50 }
 0x2c3   : > { %v1057_v0 = vpop.f32.mrf.mxu2  ;;  %1585 = vmatpush.bf16.msrb.mxu0 %v2357_v61 }
 0x2c4   : > { %v1076_v53 = vmul.f32 0.17677669, %v1057_v0  ;;  %v2232_v48 = vmul.f32 -0.17677669, %v1057_v0  ;;  %v1345_v46 = vmul.f32 %v2516_v13, %v1344_v63  ;;  %v2356_v63 = vld [vmem:[%s3341_s8 + $0x18] sm:$0xff]  ;;  %v1369_v0 = vor.u32 1.1754944e-38, %v1368_v23 }
 0x2c5   : > { %vm1367_vm4 = vcmp.eq.f32.partialorder %v1366_v25, 8.507059e+37 }
 0x2c6   : > { %v2518_v29 = vpop.eup %2517  ;;  %1092 = vst [vmem:[%s3031_s29 + $0x70] sm:$0xff] %v1076_v53  ;;  %v1157_v36 = vmul.f32 1.442695, %v2232_v48  ;;  %v1346_v33 = vadd.f32 %v2516_v13, %v1345_v46 }
 0x2c7   : > { %v2520_v60 = vpop.eup %2519  ;;  %v1174_v6 = vadd.f32 1.0, %v2518_v29  ;;  %1586 = vmatpush.bf16.msrb.mxu0 %v2356_v63 }
 0x2c8   : > { %2521 = vpow2.f32 %v1157_v36  ;;  %v1350_v51 = vsel %vm1349_vm14, %v2516_v13, %v1346_v33  ;;  %v1358_v5 = vmul.f32 %v2520_v60, %v3125_v50  ;;  %vm1363_vm0 = vweird.f32 %v2520_v60 }
 0x2c9   : > { %2523 = vrcp.f32 %v1174_v6  ;;  %v1355_v56 = vsel %vm1352_vm15, %v1354_v54, %v1350_v51  ;;  %vm3151_vm2 = vmor %vm1362_vm1, %vm1363_vm0  ;;  %v1383_v12 = vand.u32 2147483648, %v1174_v6  ;;  %v1381_v47 = vand.u32 2147483647, %v1174_v6 }
 0x2ca   : > { %v1428_v62 = vmul.f32 %v1355_v56, %v2838_v45  ;;  %v1359_v15 = vsub.f32 1.0, %v1358_v5  ;;  %vm1377_vm5 = vweird.f32 %v1174_v6 }
 0x2cb   : > { %v1059_v1 = vpop.f32.mrf.mxu2  ;;  %v1384_v48 = vor.u32 1.1754944e-38, %v1383_v12  ;;  %vm1382_vm7 = vcmp.eq.f32.partialorder %v1381_v47, 8.507059e+37 }
 0x2cc   : > { %v1077_v55 = vmul.f32 0.17677669, %v1059_v1  ;;  %v2233_v18 = vmul.f32 -0.17677669, %v1059_v1  ;;  %v1438_v43 = vpack.c.bf16 %v1428_v62, %v1427_v19  ;;  %v1360_v31 = vmul.f32 %v2520_v60, %v1359_v15  ;;  %v2355_v15 = vld [vmem:[%s3341_s8 + $0x10] sm:$0xff] }
 0x2cd   : > { %1587 = vmatpush.bf16.msrb.mxu0 %v2355_v15  ;;  %v2363_v15 = vld [vmem:[%s3343_s10 + $0x10] sm:$0xff] }
 0x2ce   : > { %v2522_v14 = vpop.eup %2521  ;;  %1093 = vst [vmem:[%s3031_s29 + $0x78] sm:$0xff] %v1077_v55  ;;  %v1159_v2 = vmul.f32 1.442695, %v2233_v18  ;;  %1474 = vmatmul.bf16.gmra.mxu3 %v1438_v43  ;;  %v1361_v11 = vadd.f32 %v2520_v60, %v1360_v31  ;;  %v2354_v18 = vld [vmem:[%s3341_s8 + $0x8] sm:$0xff] }
 0x2cf   : > { %v2524_v24 = vpop.eup %2523  ;;  %v1175_v20 = vadd.f32 1.0, %v2522_v14 }
 0x2d0   : > { %2525 = vpow2.f32 %v1159_v2  ;;  %v1373_v45 = vmul.f32 %v2524_v24, %v1174_v6  ;;  %v1365_v38 = vsel %vm3151_vm2, %v2520_v60, %v1361_v11  ;;  %vm1378_vm3 = vweird.f32 %v2524_v24 }
 0x2d1   : > { %2527 = vrcp.f32 %v1175_v20  ;;  %v1370_v53 = vsel %vm1367_vm4, %v1369_v0, %v1365_v38  ;;  %vm1379_vm6 = vmor %vm1377_vm5, %vm1378_vm3  ;;  %v1398_v56 = vand.u32 2147483648, %v1175_v20  ;;  %vm1392_vm9 = vweird.f32 %v1175_v20  ;;  %1588 = vmatpush.bf16.msrb.mxu0 %v2354_v18 }
 0x2d2   : > { %v1374_v13 = vsub.f32 1.0, %v1373_v45  ;;  %v1429_v36 = vmul.f32 %v1370_v53, %v2905_v17  ;;  %v1396_v19 = vand.u32 2147483647, %v1175_v20  ;;  %v2353_v45 = vld [vmem:[%s3341_s8] sm:$0xff] }
 0x2d3   : > { %v1399_v43 = vor.u32 1.1754944e-38, %v1398_v56  ;;  %v2365_v56 = vld [vmem:[%s3343_s10 + $0x20] sm:$0xff] }
 0x2d4   : > { %v1375_v22 = vmul.f32 %v2524_v24, %v1374_v13  ;;  %vm1397_vm12 = vcmp.eq.f32.partialorder %v1396_v19, 8.507059e+37  ;;  %v2373_v19 = vld [vmem:[%s3345_s12 + $0x20] sm:$0xff] }
 0x2d5   : > { %1589 = vmatpush.bf16.msrb.mxu0 %v2353_v45 }
 0x2d6   : > { %v2526_v42 = vpop.eup %2525  ;;  %v1376_v50 = vadd.f32 %v2524_v24, %v1375_v22 }
 0x2d7   : > { %v2528_v35 = vpop.eup %2527  ;;  %v1176_v37 = vadd.f32 1.0, %v2526_v42 }
 0x2d8   : > { %v1380_v46 = vsel %vm1379_vm6, %v2524_v24, %v1376_v50  ;;  %v1388_v27 = vmul.f32 %v2528_v35, %v1175_v20  ;;  %vm1393_vm8 = vweird.f32 %v2528_v35 }
 0x2d9   : > { %2529 = vrcp.f32 %v1176_v37  ;;  %v1385_v29 = vsel %vm1382_vm7, %v1384_v48, %v1380_v46  ;;  %vm1394_vm10 = vmor %vm1392_vm9, %vm1393_vm8  ;;  %v1413_v17 = vand.u32 2147483648, %v1176_v37  ;;  %v1411_v55 = vand.u32 2147483647, %v1176_v37 }
 0x2da   : > { %v1430_v33 = vmul.f32 %v1385_v29, %v2902_v16  ;;  %v1389_v60 = vsub.f32 1.0, %v1388_v27  ;;  %vm1407_vm13 = vweird.f32 %v1176_v37 }
 0x2db   : > { %v1414_v2 = vor.u32 1.1754944e-38, %v1413_v17  ;;  %vm1412_vm15 = vcmp.eq.f32.partialorder %v1411_v55, 8.507059e+37  ;;  %v2371_v17 = vld [vmem:[%s3345_s12 + $0x10] sm:$0xff] }
 0x2dc   : > { %v1439_v41 = vpack.c.bf16 %v1430_v33, %v1429_v36  ;;  %v1390_v54 = vmul.f32 %v2528_v35, %v1389_v60 }
 0x2de   : > { %1479 = vmatmul.bf16.gmra.mxu3 %v1439_v41  ;;  %v1391_v51 = vadd.f32 %v2528_v35, %v1390_v54  ;;  %v2367_v41 = vld [vmem:[%s3343_s10 + $0x30] sm:$0xff] }
 0x2df   : > { %v2530_v6 = vpop.eup %2529 }
 0x2e0   : > { %v1403_v5 = vmul.f32 %v2530_v6, %v1176_v37  ;;  %v1395_v1 = vsel %vm1394_vm10, %v2528_v35, %v1391_v51  ;;  %vm1408_vm11 = vweird.f32 %v2530_v6 }
 0x2e1   : > { %v1400_v14 = vsel %vm1397_vm12, %v1399_v43, %v1395_v1  ;;  %vm1409_vm14 = vmor %vm1407_vm13, %vm1408_vm11  ;;  %v2362_v1 = vld [vmem:[%s3343_s10 + $0x8] sm:$0xff] }
 0x2e2   : > { %v1404_v62 = vsub.f32 1.0, %v1403_v5  ;;  %v1431_v20 = vmul.f32 %v1400_v14, %v2861_v59  ;;  %v2361_v14 = vld [vmem:[%s3343_s10] sm:$0xff] }
 0x2e4   : > { %v1405_v16 = vmul.f32 %v2530_v6, %v1404_v62  ;;  %v2364_v62 = vld [vmem:[%s3343_s10 + $0x18] sm:$0xff] }
 0x2e6   : > { %v1406_v31 = vadd.f32 %v2530_v6, %v1405_v16  ;;  %v2370_v16 = vld [vmem:[%s3345_s12 + $0x8] sm:$0xff] }
 0x2e8   : > { %v1410_v21 = vsel %vm1409_vm14, %v2530_v6, %v1406_v31 }
 0x2e9   : > { %v1415_v24 = vsel %vm1412_vm15, %v1414_v2, %v1410_v21  ;;  %v2369_v2 = vld [vmem:[%s3345_s12] sm:$0xff] }
 0x2ea   : > { %v1432_v11 = vmul.f32 %v1415_v24, %v2922_v32 }
 0x2ec   : > { %v1440_v61 = vpack.c.bf16 %v1432_v11, %v1431_v20 }
 0x2ee   : > { %1484 = vmatmul.bf16.gmra.mxu3 %v1440_v61 }
 0x301   : > { %v1450_v23 = vpop.f32.mrf.mxu3 }
 0x302   : > { %v1490_v13 = vadd.f32 %v1450_v23, %v2856_v57 }
 0x309   : > { %v1452_v25 = vpop.f32.mrf.mxu3 }
 0x30a   : > { %v1491_v39 = vadd.f32 %v1452_v25, %v2858_v58 }
 0x30c   : > { %v1506_v12 = vpack.c.bf16 %v1491_v39, %v1490_v13 }
 0x30e   : > { %1590 = vmatmul.bf16.vlgmr.msrb.gmra.mxu0 %v1506_v12 }
 0x311   : > { %v1455_v38 = vpop.f32.mrf.mxu3 }
 0x312   : > { %v1492_v59 = vadd.f32 %v1455_v38, %v2885_v9  ;;  %v2376_v9 = vld [vmem:[%s3345_s12 + $0x38] sm:$0xff] }
 0x313   : > { %1856 = vmatpush.bf16.msrb.mxu3 %v2376_v9 }
 0x319   : > { %v1457_v22 = vpop.f32.mrf.mxu3 }
 0x31a   : > { %v1493_v32 = vadd.f32 %v1457_v22, %v2887_v10 }
 0x31c   : > { %v1507_v47 = vpack.c.bf16 %v1493_v32, %v1492_v59 }
 0x31e   : > { %1595 = vmatmul.bf16.gmra.mxu0 %v1507_v47 }
 0x321   : > { %v1460_v63 = vpop.f32.mrf.mxu3 }
 0x322   : > { %v1494_v42 = vadd.f32 %v1460_v63, %v2917_v34 }
 0x329   : > { %v1462_v0 = vpop.f32.mrf.mxu3 }
 0x32a   : > { %v1495_v50 = vadd.f32 %v1462_v0, %v2919_v40 }
 0x32c   : > { %v1508_v35 = vpack.c.bf16 %v1495_v50, %v1494_v42 }
 0x32e   : > { %1600 = vmatmul.bf16.gmra.mxu0 %v1508_v35 }
 0x331   : > { %v1465_v57 = vpop.f32.mrf.mxu3 }
 0x332   : > { %v1496_v37 = vadd.f32 %v1465_v57, %v2968_v30  ;;  %v2375_v30 = vld [vmem:[%s3345_s12 + $0x30] sm:$0xff] }
 0x333   : > { %1857 = vmatpush.bf16.msrb.mxu3 %v2375_v30 }
 0x339   : > { %v1467_v58 = vpop.f32.mrf.mxu3 }
 0x33a   : > { %v1497_v53 = vadd.f32 %v1467_v58, %v2966_v8 }
 0x33c   : > { %v1509_v48 = vpack.c.bf16 %v1497_v53, %v1496_v37 }
 0x33e   : > { %1605 = vmatmul.bf16.gmra.mxu0 %v1509_v48 }
 0x341   : > { %v1470_v10 = vpop.f32.mrf.mxu3 }
 0x342   : > { %v1498_v34 = vadd.f32 %v1470_v10, %v2958_v26  ;;  %v2368_v26 = vld [vmem:[%s3343_s10 + $0x38] sm:$0xff] }
 0x343   : > { %1723 = vmatpush.bf16.msrb.mxu1 %v2368_v26 }
 0x347   : > { %1724 = vmatpush.bf16.msrb.mxu1 %v2367_v41 }
 0x349   : > { %v1472_v46 = vpop.f32.mrf.mxu3 }
 0x34a   : > { %v1499_v40 = vadd.f32 %v1472_v46, %v2962_v28  ;;  %v2374_v28 = vld [vmem:[%s3345_s12 + $0x28] sm:$0xff] }
 0x34b   : > { %1858 = vmatpush.bf16.msrb.mxu3 %v2374_v28 }
 0x34c   : > { %v1510_v27 = vpack.c.bf16 %v1499_v40, %v1498_v34 }
 0x34e   : > { %1610 = vmatmul.bf16.gmra.mxu0 %v1510_v27 }
 0x34f   : > { %1859 = vmatpush.bf16.msrb.mxu3 %v2373_v19 }
 0x351   : > { %v1475_v8 = vpop.f32.mrf.mxu3 }
 0x352   : > { %v1500_v36 = vadd.f32 %v1475_v8, %v2950_v7 }
 0x359   : > { %v1477_v29 = vpop.f32.mrf.mxu3 }
 0x35a   : > { %v1501_v33 = vadd.f32 %v1477_v29, %v2948_v44  ;;  %v2366_v44 = vld [vmem:[%s3343_s10 + $0x28] sm:$0xff] }
 0x35b   : > { %1725 = vmatpush.bf16.msrb.mxu1 %v2366_v44 }
 0x35c   : > { %v1511_v60 = vpack.c.bf16 %v1501_v33, %v1500_v36 }
 0x35e   : > { %1615 = vmatmul.bf16.gmra.mxu0 %v1511_v60 }
 0x35f   : > { %1726 = vmatpush.bf16.msrb.mxu1 %v2365_v56 }
 0x361   : > { %v1480_v54 = vpop.f32.mrf.mxu3 }
 0x362   : > { %v1502_v6 = vadd.f32 %v1480_v54, %v2940_v4 }
 0x363   : > { %1727 = vmatpush.bf16.msrb.mxu1 %v2364_v62 }
 0x367   : > { %1728 = vmatpush.bf16.msrb.mxu1 %v2363_v15 }
 0x369   : > { %v1482_v7 = vpop.f32.mrf.mxu3 }
 0x36a   : > { %v1503_v51 = vadd.f32 %v1482_v7, %v2938_v3  ;;  %v2372_v3 = vld [vmem:[%s3345_s12 + $0x18] sm:$0xff] }
 0x36b   : > { %1860 = vmatpush.bf16.msrb.mxu3 %v2372_v3  ;;  %1729 = vmatpush.bf16.msrb.mxu1 %v2362_v1 }
 0x36c   : > { %v1512_v5 = vpack.c.bf16 %v1503_v51, %v1502_v6 }
 0x36e   : > { %1620 = vmatmul.bf16.gmra.mxu0 %v1512_v5 }
 0x36f   : > { %1861 = vmatpush.bf16.msrb.mxu3 %v2371_v17  ;;  %1730 = vmatpush.bf16.msrb.mxu1 %v2361_v14 }
 0x371   : > { %v1485_v4 = vpop.f32.mrf.mxu3 }
 0x372   : > { %v1504_v18 = vadd.f32 %v1485_v4, %v2926_v49  ;;  %v3240_v49 = vld [vmem:[%s3342_s9] ss:$0 sm:$0xff] }
 0x373   : > { %1862 = vmatpush.bf16.msrb.mxu3 %v2370_v16 }
 0x377   : > { %1863 = vmatpush.bf16.msrb.mxu3 %v2369_v2 }
 0x379   : > { %v1487_v55 = vpop.f32.mrf.mxu3 }
 0x37a   : > { %v1505_v43 = vadd.f32 %v1487_v55, %v2930_v52  ;;  %v3261_v55 = vld [vmem:[%s3346_s13] ss:$0 sm:$0xff] }
 0x37c   : > { %v1513_v31 = vpack.c.bf16 %v1505_v43, %v1504_v18 }
 0x37e   : > { %1625 = vmatmul.bf16.gmra.mxu0 %v1513_v31 }
 0x38b   : > { %v1591_v21 = vpop.f32.mrf.mxu0 }
 0x38c   : > { %v1592_v52 = vadd.f32 %v3240_v49, %v1591_v21 }
 0x38e   : > { %2531 = vtanh.f32 %v1592_v52 }
 0x393   : > { %v1593_v24 = vpop.f32.mrf.mxu0 }
 0x394   : > { %v1594_v20 = vadd.f32 %v3240_v49, %v1593_v24  ;;  %v2532_v11 = vpop.eup %2531 }
 0x396   : > { %2533 = vtanh.f32 %v1594_v20 }
 0x39b   : > { %v1596_v45 = vpop.f32.mrf.mxu0 }
 0x39c   : > { %v2534_v61 = vpop.eup %2533  ;;  %v1597_v25 = vadd.f32 %v3240_v49, %v1596_v45 }
 0x39d   : > { %v1647_v23 = vpack.c.bf16 %v2534_v61, %v2532_v11 }
 0x39e   : > { %2535 = vtanh.f32 %v1597_v25 }
 0x39f   : > { %1731 = vmatmul.bf16.vlgmr.msrb.gmra.mxu1 %v1647_v23  ;;  %1864 = vmatmul.bf16.vlgmr.msrb.gmra.mxu3 %v1647_v23 }
 0x3a3   : > { %v1598_v13 = vpop.f32.mrf.mxu0 }
 0x3a4   : > { %v1599_v39 = vadd.f32 %v3240_v49, %v1598_v13  ;;  %v2536_v12 = vpop.eup %2535 }
 0x3a6   : > { %2537 = vtanh.f32 %v1599_v39 }
 0x3ab   : > { %v1601_v38 = vpop.f32.mrf.mxu0 }
 0x3ac   : > { %v2538_v22 = vpop.eup %2537  ;;  %v1602_v32 = vadd.f32 %v3240_v49, %v1601_v38 }
 0x3ad   : > { %v1648_v59 = vpack.c.bf16 %v2538_v22, %v2536_v12 }
 0x3ae   : > { %2539 = vtanh.f32 %v1602_v32 }
 0x3af   : > { %1736 = vmatmul.bf16.gmra.mxu1 %v1648_v59  ;;  %1869 = vmatmul.bf16.gmra.mxu3 %v1648_v59 }
 0x3b3   : > { %v1603_v47 = vpop.f32.mrf.mxu0 }
 0x3b4   : > { %v1604_v63 = vadd.f32 %v3240_v49, %v1603_v47  ;;  %v2540_v0 = vpop.eup %2539 }
 0x3b6   : > { %2541 = vtanh.f32 %v1604_v63 }
 0x3bb   : > { %v1606_v42 = vpop.f32.mrf.mxu0 }
 0x3bc   : > { %v2542_v50 = vpop.eup %2541  ;;  %v1607_v57 = vadd.f32 %v3240_v49, %v1606_v42 }
 0x3bd   : > { %v1649_v35 = vpack.c.bf16 %v2542_v50, %v2540_v0 }
 0x3be   : > { %2543 = vtanh.f32 %v1607_v57 }
 0x3bf   : > { %1741 = vmatmul.bf16.gmra.mxu1 %v1649_v35  ;;  %1874 = vmatmul.bf16.gmra.mxu3 %v1649_v35 }
 0x3c3   : > { %v1608_v58 = vpop.f32.mrf.mxu0 }
 0x3c4   : > { %v1609_v37 = vadd.f32 %v3240_v49, %v1608_v58  ;;  %v2544_v53 = vpop.eup %2543 }
 0x3c6   : > { %2545 = vtanh.f32 %v1609_v37 }
 0x3cb   : > { %v1611_v48 = vpop.f32.mrf.mxu0 }
 0x3cc   : > { %v2546_v9 = vpop.eup %2545  ;;  %v1612_v46 = vadd.f32 %v3240_v49, %v1611_v48 }
 0x3cd   : > { %v1650_v10 = vpack.c.bf16 %v2546_v9, %v2544_v53 }
 0x3ce   : > { %2547 = vtanh.f32 %v1612_v46 }
 0x3cf   : > { %1746 = vmatmul.bf16.gmra.mxu1 %v1650_v10  ;;  %1879 = vmatmul.bf16.gmra.mxu3 %v1650_v10 }
 0x3d3   : > { %v1613_v34 = vpop.f32.mrf.mxu0 }
 0x3d4   : > { %v1614_v40 = vadd.f32 %v3240_v49, %v1613_v34  ;;  %v2548_v27 = vpop.eup %2547 }
 0x3d6   : > { %2549 = vtanh.f32 %v1614_v40 }
 0x3db   : > { %v1616_v30 = vpop.f32.mrf.mxu0 }
 0x3dc   : > { %v2550_v8 = vpop.eup %2549  ;;  %v1617_v36 = vadd.f32 %v3240_v49, %v1616_v30 }
 0x3dd   : > { %v1651_v29 = vpack.c.bf16 %v2550_v8, %v2548_v27 }
 0x3de   : > { %2551 = vtanh.f32 %v1617_v36 }
 0x3df   : > { %1751 = vmatmul.bf16.gmra.mxu1 %v1651_v29  ;;  %1884 = vmatmul.bf16.gmra.mxu3 %v1651_v29 }
 0x3e3   : > { %v1618_v33 = vpop.f32.mrf.mxu0 }
 0x3e4   : > { %v1619_v60 = vadd.f32 %v3240_v49, %v1618_v33  ;;  %v2552_v26 = vpop.eup %2551 }
 0x3e6   : > { %2553 = vtanh.f32 %v1619_v60 }
 0x3eb   : > { %v1621_v28 = vpop.f32.mrf.mxu0 }
 0x3ec   : > { %v2554_v41 = vpop.eup %2553  ;;  %v1622_v44 = vadd.f32 %v3240_v49, %v1621_v28 }
 0x3ed   : > { %v1652_v54 = vpack.c.bf16 %v2554_v41, %v2552_v26 }
 0x3ee   : > { %2555 = vtanh.f32 %v1622_v44 }
 0x3ef   : > { %1756 = vmatmul.bf16.gmra.mxu1 %v1652_v54  ;;  %1889 = vmatmul.bf16.gmra.mxu3 %v1652_v54 }
 0x3f3   : > { %v1623_v7 = vpop.f32.mrf.mxu0 }
 0x3f4   : > { %v1624_v6 = vadd.f32 %v3240_v49, %v1623_v7  ;;  %v2556_v51 = vpop.eup %2555 }
 0x3f6   : > { %2557 = vtanh.f32 %v1624_v6 }
 0x3fb   : > { %v1626_v5 = vpop.f32.mrf.mxu0 }
 0x3fc   : > { %v2558_v56 = vpop.eup %2557  ;;  %v1627_v62 = vadd.f32 %v3240_v49, %v1626_v5 }
 0x3fd   : > { %v1653_v19 = vpack.c.bf16 %v2558_v56, %v2556_v51 }
 0x3fe   : > { %2559 = vtanh.f32 %v1627_v62 }
 0x3ff   : > { %1761 = vmatmul.bf16.gmra.mxu1 %v1653_v19  ;;  %1894 = vmatmul.bf16.gmra.mxu3 %v1653_v19 }
 0x403   : > { %v1628_v3 = vpop.f32.mrf.mxu0 }
 0x404   : > { %v1629_v4 = vadd.f32 %v3240_v49, %v1628_v3  ;;  %v2560_v15 = vpop.eup %2559 }
 0x406   : > { %2561 = vtanh.f32 %v1629_v4 }
 0x40c   : > { %v2562_v17 = vpop.eup %2561 }
 0x40d   : > { %v1654_v1 = vpack.c.bf16 %v2562_v17, %v2560_v15 }
 0x40f   : > { %1766 = vmatmul.bf16.gmra.mxu1 %v1654_v1  ;;  %1899 = vmatmul.bf16.gmra.mxu3 %v1654_v1  ;;  %v3286_v1 = vld [vmem:[%s3344_s11] ss:$0 sm:$0xff] }
 0x41c   : > { %v1732_v36 = vpop.f32.mrf.mxu1 }
 0x422   : > { %v1865_v16 = vpop.f32.mrf.mxu3 }
 0x423   : > { %v1866_v18 = vadd.f32 %v3261_v55, %v1865_v16 }
 0x424   : > { %v1734_v54 = vpop.f32.mrf.mxu1 }
 0x425   : > { %2563 = vtanh.f32 %v1866_v18  ;;  %v1735_v16 = vadd.f32 %v3286_v1, %v1734_v54  ;;  %v1733_v18 = vadd.f32 %v3286_v1, %v1732_v36 }
 0x42a   : > { %v1867_v43 = vpop.f32.mrf.mxu3 }
 0x42b   : > { %v1868_v31 = vadd.f32 %v3261_v55, %v1867_v43  ;;  %v2564_v14 = vpop.eup %2563 }
 0x42c   : > { %v1737_v19 = vpop.f32.mrf.mxu1 }
 0x42d   : > { %2565 = vtanh.f32 %v1868_v31  ;;  %v1738_v43 = vadd.f32 %v3286_v1, %v1737_v19 }
 0x432   : > { %v1870_v2 = vpop.f32.mrf.mxu3 }
 0x433   : > { %v2566_v21 = vpop.eup %2565  ;;  %v1871_v52 = vadd.f32 %v3261_v55, %v1870_v2 }
 0x434   : > { %v3265_v49 = vpack.c.bf16 %v2566_v21, %v2564_v14  ;;  %v1739_v4 = vpop.f32.mrf.mxu1 }
 0x435   : > { %2567 = vtanh.f32 %v1871_v52 }
 0x43a   : > { %v1872_v24 = vpop.f32.mrf.mxu3 }
 0x43b   : > { %v1873_v20 = vadd.f32 %v3261_v55, %v1872_v24  ;;  %v2568_v11 = vpop.eup %2567 }
 0x43c   : > { %v1742_v15 = vpop.f32.mrf.mxu1 }
 0x43d   : > { %2569 = vtanh.f32 %v1873_v20 }
 0x442   : > { %v1875_v45 = vpop.f32.mrf.mxu3 }
 0x443   : > { %v2570_v61 = vpop.eup %2569  ;;  %v1876_v25 = vadd.f32 %v3261_v55, %v1875_v45 }
 0x444   : > { %v3269_v23 = vpack.c.bf16 %v2570_v61, %v2568_v11  ;;  %v1744_v17 = vpop.f32.mrf.mxu1  ;;  %v1743_v61 = vadd.f32 %v3286_v1, %v1742_v15 }
 0x445   : > { %2571 = vtanh.f32 %v1876_v25  ;;  %v1745_v45 = vadd.f32 %v3286_v1, %v1744_v17 }
 0x44a   : > { %v1877_v13 = vpop.f32.mrf.mxu3 }
 0x44b   : > { %v1878_v39 = vadd.f32 %v3261_v55, %v1877_v13  ;;  %v2572_v12 = vpop.eup %2571 }
 0x44c   : > { %v1747_v31 = vpop.f32.mrf.mxu1 }
 0x44d   : > { %2573 = vtanh.f32 %v1878_v39 }
 0x452   : > { %v1880_v38 = vpop.f32.mrf.mxu3 }
 0x453   : > { %v2574_v22 = vpop.eup %2573  ;;  %v1881_v32 = vadd.f32 %v3261_v55, %v1880_v38  ;;  %v1748_v38 = vadd.f32 %v3286_v1, %v1747_v31 }
 0x454   : > { %v1931_v59 = vpack.c.bf16 %v2574_v22, %v2572_v12  ;;  %v1749_v20 = vpop.f32.mrf.mxu1 }
 0x455   : > { %2575 = vtanh.f32 %v1881_v32 }
 0x45a   : > { %v1882_v47 = vpop.f32.mrf.mxu3 }
 0x45b   : > { %v1883_v63 = vadd.f32 %v3261_v55, %v1882_v47  ;;  %v2576_v0 = vpop.eup %2575 }
 0x45d   : > { %2577 = vtanh.f32 %v1883_v63 }
 0x462   : > { %v1885_v42 = vpop.f32.mrf.mxu3 }
 0x463   : > { %v2578_v50 = vpop.eup %2577  ;;  %v1886_v57 = vadd.f32 %v3261_v55, %v1885_v42 }
 0x464   : > { %v1932_v35 = vpack.c.bf16 %v2578_v50, %v2576_v0 }
 0x465   : > { %2579 = vtanh.f32 %v1886_v57 }
 0x46a   : > { %v1887_v58 = vpop.f32.mrf.mxu3 }
 0x46b   : > { %v1888_v37 = vadd.f32 %v3261_v55, %v1887_v58  ;;  %v2580_v53 = vpop.eup %2579 }
 0x46d   : > { %2581 = vtanh.f32 %v1888_v37 }
 0x472   : > { %v1890_v48 = vpop.f32.mrf.mxu3 }
 0x473   : > { %v2582_v9 = vpop.eup %2581  ;;  %v1891_v6 = vadd.f32 %v3261_v55, %v1890_v48 }
 0x474   : > { %v1933_v10 = vpack.c.bf16 %v2582_v9, %v2580_v53 }
 0x47a   : > { %v1892_v46 = vpop.f32.mrf.mxu3 }
 0x47b   : > { %v1893_v44 = vadd.f32 %v3261_v55, %v1892_v46 }
 0x482   : > { %v1895_v34 = vpop.f32.mrf.mxu3 }
 0x483   : > { %v1896_v60 = vadd.f32 %v3261_v55, %v1895_v34 }
 0x48a   : > { %v1897_v40 = vpop.f32.mrf.mxu3 }
 0x48b   : > { %v1898_v33 = vadd.f32 %v3261_v55, %v1897_v40 }
 0x492   : > { %v1900_v27 = vpop.f32.mrf.mxu3 }
 0x493   : > { %v1901_v30 = vadd.f32 %v3261_v55, %v1900_v27 }
 0x495   : > { %2583 = vtanh.f32 %v1901_v30 }
 0x49a   : > { %v1902_v8 = vpop.f32.mrf.mxu3 }
 0x49b   : > { %v1903_v29 = vadd.f32 %v3261_v55, %v1902_v8  ;;  %v2584_v26 = vpop.eup %2583  ;;  %v1740_v55 = vadd.f32 %v3286_v1, %v1739_v4 }
 0x49d   : > { %2585 = vtanh.f32 %v1903_v29 }
 0x49e   : > { %2587 = vtanh.f32 %v1898_v33 }
 0x49f   : > { %2589 = vtanh.f32 %v1896_v60 }
 0x4a0   : > { %2591 = vtanh.f32 %v1893_v44 }
 0x4a1   : > { %2593 = vtanh.f32 %v1891_v6 }
 0x4a2   : > { %2595 = vtanh.f32 %v1735_v16 }
 0x4a3   : > { %v2586_v28 = vpop.eup %2585  ;;  %2597 = vtanh.f32 %v1740_v55 }
 0x4a4   : > { %v1936_v41 = vpack.c.bf16 %v2586_v28, %v2584_v26  ;;  %v2588_v7 = vpop.eup %2587  ;;  %2599 = vtanh.f32 %v1733_v18 }
 0x4a5   : > { %v2590_v51 = vpop.eup %2589  ;;  %2601 = vtanh.f32 %v1738_v43 }
 0x4a6   : > { %1937 = vmatpush.bf16.xpose.msra.mxu0 %v1936_v41  ;;  %2377 = vmatpush.bf16.xpose.msrb.mxu2 %v1936_v41  ;;  %v1935_v5 = vpack.c.bf16 %v2588_v7, %v2590_v51  ;;  %v2592_v56 = vpop.eup %2591  ;;  %2603 = vtanh.f32 %v1745_v45 }
 0x4a7   : > { %v2594_v62 = vpop.eup %2593  ;;  %2605 = vtanh.f32 %v1743_v61 }
 0x4a8   : > { %v1934_v3 = vpack.c.bf16 %v2592_v56, %v2594_v62  ;;  %v2596_v14 = vpop.eup %2595 }
 0x4a9   : > { %v2598_v2 = vpop.eup %2597 }
 0x4aa   : > { %v2600_v21 = vpop.eup %2599 }
 0x4ab   : > { %v2602_v52 = vpop.eup %2601  ;;  %v1921_v24 = vpack.c.bf16 %v2596_v14, %v2600_v21 }
 0x4ac   : > { %v1922_v11 = vpack.c.bf16 %v2598_v2, %v2602_v52  ;;  %v2604_v25 = vpop.eup %2603 }
 0x4ad   : > { %v2606_v13 = vpop.eup %2605 }
 0x4ae   : > { %1938 = vmatpush.bf16.xpose.msra.mxu0 %v1935_v5  ;;  %2378 = vmatpush.bf16.xpose.msrb.mxu2 %v1935_v5  ;;  %v1923_v39 = vpack.c.bf16 %v2604_v25, %v2606_v13 }
 0x4b6   : > { %1939 = vmatpush.bf16.xpose.msra.mxu0 %v1934_v3  ;;  %2379 = vmatpush.bf16.xpose.msrb.mxu2 %v1934_v3 }
 0x4be   : > { %1940 = vmatpush.bf16.xpose.msra.mxu0 %v1933_v10  ;;  %2380 = vmatpush.bf16.xpose.msrb.mxu2 %v1933_v10 }
 0x4c6   : > { %1941 = vmatpush.bf16.xpose.msra.mxu0 %v1932_v35  ;;  %2381 = vmatpush.bf16.xpose.msrb.mxu2 %v1932_v35 }
 0x4ce   : > { %1942 = vmatpush.bf16.xpose.msra.mxu0 %v1931_v59  ;;  %2382 = vmatpush.bf16.xpose.msrb.mxu2 %v1931_v59 }
 0x4d6   : > { %1943 = vmatpush.bf16.xpose.msra.mxu0 %v3269_v23  ;;  %2383 = vmatpush.bf16.xpose.msrb.mxu2 %v3269_v23  ;;  %v1752_v23 = vpop.f32.mrf.mxu1 }
 0x4d7   : > { %v1753_v0 = vadd.f32 %v3286_v1, %v1752_v23 }
 0x4de   : > { %1944 = vmatpush.bf16.xpose.msra.mxu0 %v3265_v49  ;;  %2384 = vmatpush.bf16.xpose.msrb.mxu2 %v3265_v49  ;;  %v1750_v49 = vadd.f32 %v3286_v1, %v1749_v20  ;;  %v1754_v12 = vpop.f32.mrf.mxu1 }
 0x4df   : > { %v1755_v63 = vadd.f32 %v3286_v1, %v1754_v12 }
 0x4e0   : > { %2607 = vtanh.f32 %v1750_v49 }
 0x4e1   : > { %2609 = vtanh.f32 %v1748_v38 }
 0x4e2   : > { %2611 = vtanh.f32 %v1755_v63 }
 0x4e3   : > { %2613 = vtanh.f32 %v1753_v0 }
 0x4e5   : > { %1945 = vmatmul.bf16.vlgmr.msra.gmra.mxu0 %v1921_v24  ;;  %1950 = vmatmul.bf16.vlgmr.msrb.gmra.mxu2 %v1922_v11 }
 0x4e6   : > { %v2608_v22 = vpop.eup %2607  ;;  %v1757_v59 = vpop.f32.mrf.mxu1 }
 0x4e7   : > { %v2610_v32 = vpop.eup %2609  ;;  %v1758_v53 = vadd.f32 %v3286_v1, %v1757_v59 }
 0x4e8   : > { %v1924_v47 = vpack.c.bf16 %v2608_v22, %v2610_v32  ;;  %v2612_v50 = vpop.eup %2611 }
 0x4e9   : > { %v2614_v35 = vpop.eup %2613 }
 0x4ea   : > { %v1925_v57 = vpack.c.bf16 %v2612_v50, %v2614_v35 }
 0x4ee   : > { %v1759_v42 = vpop.f32.mrf.mxu1 }
 0x4ef   : > { %v1760_v37 = vadd.f32 %v3286_v1, %v1759_v42 }
 0x4f1   : > { %2615 = vtanh.f32 %v1760_v37 }
 0x4f2   : > { %2617 = vtanh.f32 %v1758_v53 }
 0x4f5   : > { %1955 = vmatmul.bf16.gmra.mxu2 %v1923_v39 }
 0x4f6   : > { %v1762_v58 = vpop.f32.mrf.mxu1 }
 0x4f7   : > { %v2616_v9 = vpop.eup %2615  ;;  %v1763_v40 = vadd.f32 %v3286_v1, %v1762_v58 }
 0x4f8   : > { %v2618_v10 = vpop.eup %2617 }
 0x4f9   : > { %v1926_v46 = vpack.c.bf16 %v2616_v9, %v2618_v10 }
 0x4fe   : > { %v1764_v48 = vpop.f32.mrf.mxu1 }
 0x4ff   : > { %v1765_v34 = vadd.f32 %v3286_v1, %v1764_v48 }
 0x501   : > { %2619 = vtanh.f32 %v1765_v34 }
 0x502   : > { %2621 = vtanh.f32 %v1763_v40 }
 0x505   : > { %1960 = vmatmul.bf16.gmra.mxu2 %v1924_v47 }
 0x506   : > { %v1767_v27 = vpop.f32.mrf.mxu1 }
 0x507   : > { %v2620_v30 = vpop.eup %2619  ;;  %v1768_v60 = vadd.f32 %v3286_v1, %v1767_v27 }
 0x508   : > { %v2622_v8 = vpop.eup %2621 }
 0x509   : > { %v1927_v36 = vpack.c.bf16 %v2620_v30, %v2622_v8 }
 0x50e   : > { %v1769_v29 = vpop.f32.mrf.mxu1 }
 0x50f   : > { %v1770_v33 = vadd.f32 %v3286_v1, %v1769_v29 }
 0x511   : > { %2623 = vtanh.f32 %v1770_v33 }
 0x512   : > { %2625 = vtanh.f32 %v1768_v60 }
 0x515   : > { %1965 = vmatmul.bf16.gmra.mxu2 %v1925_v57 }
 0x517   : > { %v2624_v26 = vpop.eup %2623 }
 0x518   : > { %v2626_v28 = vpop.eup %2625 }
 0x519   : > { %v1928_v41 = vpack.c.bf16 %v2624_v26, %v2626_v28 }
 0x525   : > { %1970 = vmatmul.bf16.gmra.mxu2 %v1926_v46 }
 0x535   : > { %1975 = vmatmul.bf16.gmra.mxu2 %v1927_v36 }
 0x545   : > { %1980 = vmatmul.bf16.gmra.mxu2 %v1928_v41 }
 0x562   : > { %v1946_v54 = vpop.f32.mrf.mxu0 }
 0x563   : > { %v1986_v44 = vmul.f32 0.17677669, %v1946_v54 }
 0x565   : > { %2002 = vst [vmem:[%s3312_s17] sm:$0xff] %v1986_v44 }
 0x568   : > { %v1951_v7 = vpop.f32.mrf.mxu2 }
 0x569   : > { %v1988_v6 = vmul.f32 0.17677669, %v1951_v7 }
 0x56a   : > { %v1948_v51 = vpop.f32.mrf.mxu0 }
 0x56b   : > { %2004 = vst [vmem:[%s3312_s17 + $0x10] sm:$0xff] %v1988_v6  ;;  %v1987_v5 = vmul.f32 0.17677669, %v1948_v51 }
 0x56d   : > { %2003 = vst [vmem:[%s3312_s17 + $0x8] sm:$0xff] %v1987_v5 }
 0x570   : > { %v1953_v56 = vpop.f32.mrf.mxu2 }
 0x571   : > { %v1989_v19 = vmul.f32 0.17677669, %v1953_v56 }
 0x573   : > { %2005 = vst [vmem:[%s3312_s17 + $0x18] sm:$0xff] %v1989_v19 }
 0x578   : > { %v1956_v62 = vpop.f32.mrf.mxu2 }
 0x579   : > { %v1990_v3 = vmul.f32 0.17677669, %v1956_v62 }
 0x57b   : > { %2006 = vst [vmem:[%s3312_s17 + $0x20] sm:$0xff] %v1990_v3 }
 0x580   : > { %v1958_v4 = vpop.f32.mrf.mxu2 }
 0x581   : > { %v1991_v15 = vmul.f32 0.17677669, %v1958_v4 }
 0x583   : > { %2007 = vst [vmem:[%s3312_s17 + $0x28] sm:$0xff] %v1991_v15 }
 0x588   : > { %v1961_v17 = vpop.f32.mrf.mxu2 }
 0x589   : > { %v1992_v1 = vmul.f32 0.17677669, %v1961_v17 }
 0x58b   : > { %2008 = vst [vmem:[%s3312_s17 + $0x30] sm:$0xff] %v1992_v1 }
 0x590   : > { %v1963_v16 = vpop.f32.mrf.mxu2 }
 0x591   : > { %v1993_v55 = vmul.f32 0.17677669, %v1963_v16 }
 0x593   : > { %2009 = vst [vmem:[%s3312_s17 + $0x38] sm:$0xff] %v1993_v55 }
 0x598   : > { %v1966_v18 = vpop.f32.mrf.mxu2 }
 0x599   : > { %v1994_v43 = vmul.f32 0.17677669, %v1966_v18 }
 0x59b   : > { %2010 = vst [vmem:[%s3312_s17 + $0x40] sm:$0xff] %v1994_v43 }
 0x5a0   : > { %v1968_v31 = vpop.f32.mrf.mxu2 }
 0x5a1   : > { %v1995_v14 = vmul.f32 0.17677669, %v1968_v31 }
 0x5a3   : > { %2011 = vst [vmem:[%s3312_s17 + $0x48] sm:$0xff] %v1995_v14 }
 0x5a8   : > { %v1971_v2 = vpop.f32.mrf.mxu2 }
 0x5a9   : > { %v1996_v21 = vmul.f32 0.17677669, %v1971_v2 }
 0x5ab   : > { %2012 = vst [vmem:[%s3312_s17 + $0x50] sm:$0xff] %v1996_v21 }
 0x5b0   : > { %v1973_v52 = vpop.f32.mrf.mxu2 }
 0x5b1   : > { %v1997_v24 = vmul.f32 0.17677669, %v1973_v52 }
 0x5b3   : > { %2013 = vst [vmem:[%s3312_s17 + $0x58] sm:$0xff] %v1997_v24 }
 0x5b8   : > { %v1976_v20 = vpop.f32.mrf.mxu2 }
 0x5b9   : > { %v1998_v11 = vmul.f32 0.17677669, %v1976_v20 }
 0x5bb   : > { %2014 = vst [vmem:[%s3312_s17 + $0x60] sm:$0xff] %v1998_v11 }
 0x5c0   : > { %v1978_v45 = vpop.f32.mrf.mxu2 }
 0x5c1   : > { %v1999_v61 = vmul.f32 0.17677669, %v1978_v45 }
 0x5c3   : > { %2015 = vst [vmem:[%s3312_s17 + $0x68] sm:$0xff] %v1999_v61 }
 0x5c8   : > { %v1981_v23 = vpop.f32.mrf.mxu2 }
 0x5c9   : > { %v2000_v25 = vmul.f32 0.17677669, %v1981_v23 }
 0x5cb   : > { %2016 = vst [vmem:[%s3312_s17 + $0x70] sm:$0xff] %v2000_v25 }
 0x5d0   : > { %v1983_v13 = vpop.f32.mrf.mxu2 }
 0x5d1   : > { %v2001_v39 = vmul.f32 0.17677669, %v1983_v13 }
 0x5d3   : > { %2017 = vst [vmem:[%s3312_s17 + $0x78] sm:$0xff] %v2001_v39 }
 0x5d4 PF: > { %s26_s18 = sadd.s32 1, %s2633_s18  }
 0x5d5   : > { %p23_p4 = scmp.ge.s32.totalorder %s26_s18, 4  }
 0x5d7   :  { %25 = sbr.rel (!%p23_p4) target bundleno = 1 (0x1), region = 127 }

</bundles_post_ra>
